<compile_context>
chip_gen: v6e
topology: v6e:2x2x1
jax: 0.10.0
libtpu: 0.0.40
codegen_flags: <defaults>
</compile_context>

<pallas_src>
from functools import partial

import jax
import jax.numpy as jnp
from jax.experimental import pallas as pl
from jax.experimental.pallas import tpu as pltpu

_LANE = 128
_VMEM_TILE_BUDGET = 24 << 20      # explicit tile budget (safe on v7x's 64 MiB)
_VMEM_LIMIT_BYTES = 48 << 20      # raise scoped VMEM (v5e default is only 16 MiB)


def _round_up(n, m):
    return ((n + m - 1) // m) * m


def _cdiv(a, b):
    return -(-a // b)


def _deep_attention_kernel(x_ref, ctx_ref, w_in_t_ref, w_v_ref,
                           w_out_c_t_ref, w_out_x_t_ref,
                           h_ref, attn_ref, *, l_actual):
    f32 = jnp.float32
    x = x_ref[...]                       # (TB, Dp)    compute dtype (f32 / bf16)
    ctx = ctx_ref[...]                   # (TB, Lp, Dp)
    w_in_t = w_in_t_ref[...]             # (Dp, Dp)    == W_in^T (padded)
    w_v = w_v_ref[...]                   # (1, Dp)     f32
    w_out_c_t = w_out_c_t_ref[...]       # (Dp, Dp)    == W_out[:, :D]^T
    w_out_x_t = w_out_x_t_ref[...]       # (Dp, Dp)    == W_out[:, D:]^T

    tb, lp, dp = ctx.shape
    la = attn_ref.shape[-1]
    cdt = ctx.dtype

    # u = ReLU(x @ W_in^T); v = ReLU(ctx @ W_in^T).  Resident weight, f32
    # accumulation.  v is cast back to the MXU operand dtype so the following
    # batched contractions run at full bf16 rate (and the big (TB, Lp, Dp)
    # temporary is half-sized on the bf16 path).
    u = jnp.maximum(jnp.dot(x, w_in_t, preferred_element_type=f32), 0.0)    # (TB, Dp) f32
    v = jnp.maximum(
        jnp.dot(ctx.reshape(tb * lp, dp), w_in_t, preferred_element_type=f32),
        0.0).astype(cdt).reshape(tb, lp, dp)                                 # (TB, Lp, Dp)

    # logits[b, l] = sum_d (u * w_v)[b, d] * v[b, l, d]  (batched MXU contraction)
    uw3 = (u * w_v).astype(cdt)[:, None, :]                                  # (TB, 1, Dp)
    logits = jnp.einsum('bqd,bkd->bqk', uw3, v,
                        preferred_element_type=f32)                          # (TB, 1, Lp)

    # Mask padded source positions (statically skipped when L == Lp).
    if l_actual < lp:
        l_ids = jax.lax.broadcasted_iota(jnp.int32, (tb, 1, lp), 2)
        logits = jnp.where(l_ids < l_actual, logits, -1e30)

    # Softmax over source positions; exact divide so attn rows sum to 1.
    m = jnp.max(logits, axis=-1, keepdims=True)
    e = jnp.exp(logits - m)
    s = jnp.sum(e, axis=-1, keepdims=True)
    attn3 = e * (1.0 / s)                                                    # (TB, 1, Lp) f32

    # Lane-dense attn writeback: output block is La (= round_up(Lp, 128)) wide.
    attn2 = attn3.reshape(tb, lp).astype(attn_ref.dtype)
    if la > lp:
        attn_ref[...] = jnp.zeros((tb, la), attn_ref.dtype)
        attn_ref[:, :lp] = attn2
    else:
        attn_ref[...] = attn2

    # Weighted context: batched (1, L) @ (L, D) on the MXU.
    wc = jnp.einsum('bqk,bkd->bqd', attn3.astype(cdt), ctx,
                    preferred_element_type=f32).reshape(tb, dp)              # (TB, Dp) f32

    # h = tanh(wc @ W_out_c^T + x @ W_out_x^T)  -- two dots against resident
    # Dp x Dp halves; avoids the (TB, 2Dp) concatenate copy on the store path.
    h = (jnp.dot(wc.astype(cdt), w_out_c_t, preferred_element_type=f32)
         + jnp.dot(x, w_out_x_t, preferred_element_type=f32))
    h_ref[...] = jnp.tanh(h).astype(h_ref.dtype)


def prepare_params(w_in, w_v, w_out, dtype=jnp.float32):
    """One-time weight prep: transpose, split and pad to lane-aligned shapes.

    w_in: (D, D), w_v: (1, D), w_out: (D, 2D)  (nn.Linear weights, bias=False).
    `dtype` is the MXU operand dtype: jnp.float32 or jnp.bfloat16 (bf16 runs
    at full MXU rate on v5e/v6e/v7x; softmax / tanh stay f32 in-kernel).
    """
    D = w_in.shape[0]
    Dp = _round_up(D, _LANE)
    w_in_t = jnp.zeros((Dp, Dp), dtype).at[:D, :D].set(w_in.T.astype(dtype))
    w_v_row = jnp.zeros((1, Dp), jnp.float32).at[:, :D].set(
        w_v.reshape(1, D).astype(jnp.float32))
    w_out_c_t = jnp.zeros((Dp, Dp), dtype).at[:D, :D].set(
        w_out[:, :D].T.astype(dtype))
    w_out_x_t = jnp.zeros((Dp, Dp), dtype).at[:D, :D].set(
        w_out[:, D:].T.astype(dtype))
    return w_in_t, w_v_row, w_out_c_t, w_out_x_t


@partial(jax.jit, static_argnames=("block_b", "single_buffer_weights"))
def deep_attention(x, ctx, params, block_b=64, single_buffer_weights=True):
    """x: (B, D), ctx: (B, L, D), params from prepare_params(). Returns (h, attn)."""
    w_in_t, w_v_row, w_out_c_t, w_out_x_t = params
    B, L, D = ctx.shape
    Dp = w_in_t.shape[0]
    cdt = w_in_t.dtype                    # dtype fed to the MXU (f32 or bf16)
    isz = jnp.dtype(cdt).itemsize

    # bf16 packs two rows per sublane: use 16-row sublane granularity for it.
    sub = 16 if isz == 2 else 8
    Lp = _round_up(L, sub)
    La = _round_up(Lp, _LANE)             # lane-dense attn output width

    # --- batch tile: VMEM budget + aim for >= ~4 grid steps (megacore / DMA overlap).
    w_bytes = (3 * Dp * Dp) * isz + Dp * 4
    if not single_buffer_weights:
        w_bytes *= 2
    per_row = (2 * Lp * Dp * isz          # double-buffered ctx tile
               + Lp * Dp * 4              # f32 `v` intermediate
               + 2 * Dp * isz             # double-buffered x tile
               + 2 * Dp * 4               # double-buffered h tile
               + 2 * La * 4)              # double-buffered attn tile
    tb_budget = max(sub, ((_VMEM_TILE_BUDGET - w_bytes) // per_row) // sub * sub)

    Bsub = _round_up(B, sub)
    tb_steps = max(sub, _round_up(_cdiv(Bsub, 4), sub))
    TB = max(sub, min(_round_up(block_b, sub), tb_budget, tb_steps, Bsub))
    Bp = _round_up(Bsub, TB)

    # --- skip host-side zero-pad/copy when already aligned (kernel is HBM-bound on ctx).
    if Bp == B and Dp == D and x.dtype == cdt:
        xp = x
    else:
        xp = jnp.zeros((Bp, Dp), cdt).at[:B, :D].set(x.astype(cdt))
    if Bp == B and Lp == L and Dp == D and ctx.dtype == cdt:
        ctxp = ctx
    else:
        ctxp = jnp.zeros((Bp, Lp, Dp), cdt).at[:B, :L, :D].set(ctx.astype(cdt))

    w_kw = dict(pipeline_mode=pl.Buffered(buffer_count=1)) if single_buffer_weights else {}

    cost = pl.CostEstimate(
        flops=int(2 * B * L * D * D      # v = ctx @ W_in^T
                  + 2 * B * D * D        # u = x @ W_in^T
                  + 4 * B * L * D        # logits + weighted context
                  + 4 * B * D * D),      # output projection (K = 2D)
        transcendentals=int(B * L + B * D),
        bytes_accessed=int(xp.size * isz + ctxp.size * isz
                           + (3 * Dp * Dp + Dp) * isz
                           + Bp * Dp * 4 + Bp * La * 4),
    )

    kernel = partial(_deep_attention_kernel, l_actual=L)
    h_p, attn_p = pl.pallas_call(
        kernel,
        out_shape=(
            jax.ShapeDtypeStruct((Bp, Dp), jnp.float32),
            jax.ShapeDtypeStruct((Bp, La), jnp.float32),
        ),
        grid_spec=pltpu.PrefetchScalarGridSpec(
            num_scalar_prefetch=0,
            grid=(Bp // TB,),
            in_specs=[
                pl.BlockSpec((TB, Dp), lambda i: (i, 0)),           # x tile
                pl.BlockSpec((TB, Lp, Dp), lambda i: (i, 0, 0)),    # ctx tile
                pl.BlockSpec((Dp, Dp), lambda i: (0, 0), **w_kw),   # W_in^T (resident)
                pl.BlockSpec((1, Dp), lambda i: (0, 0), **w_kw),    # w_v    (resident)
                pl.BlockSpec((Dp, Dp), lambda i: (0, 0), **w_kw),   # W_out_c^T (resident)
                pl.BlockSpec((Dp, Dp), lambda i: (0, 0), **w_kw),   # W_out_x^T (resident)
            ],
            out_specs=[
                pl.BlockSpec((TB, Dp), lambda i: (i, 0)),           # h tile
                pl.BlockSpec((TB, La), lambda i: (i, 0)),           # attn tile (lane-dense)
            ],
        ),
        compiler_params=pltpu.CompilerParams(
            dimension_semantics=("parallel",),
            vmem_limit_bytes=_VMEM_LIMIT_BYTES),
        cost_estimate=cost,
    )(xp, ctxp, w_in_t, w_v_row, w_out_c_t, w_out_x_t)

    return h_p[:B, :D].astype(x.dtype), attn_p[:B, :L].astype(x.dtype)


def _reference(x, ctx, w_in, w_v, w_out):
    """Pure-JAX reference mirroring the PyTorch forward (mask=None)."""
    B, L, D = ctx.shape
    u = jax.nn.relu(x @ w_in.T)                       # (B, D)
    v = jax.nn.relu(ctx @ w_in.T)                     # (B, L, D)
    logits = jnp.einsum('bld,d->bl', u[:, None, :] * v, w_v.reshape(D))
    attn = jax.nn.softmax(logits, axis=1)
    wc = jnp.einsum('bl,bld->bd', attn, ctx)
    h = jnp.tanh(jnp.concatenate([wc, x], axis=1) @ w_out.T)
    return h, attn


if __name__ == "__main__":
    B, L, D = 2, 8, 32
    key = jax.random.PRNGKey(0)
    kx, kc, k1, k2, k3 = jax.random.split(key, 5)

    x = jax.random.normal(kx, (B, D), dtype=jnp.float32)
    ctx = jax.random.normal(kc, (B, L, D), dtype=jnp.float32)

    # Deterministic parameter init (uniform like nn.Linear, bias=False)
    bound_in = 1.0 / (D ** 0.5)
    bound_out = 1.0 / ((2 * D) ** 0.5)
    w_in = jax.random.uniform(k1, (D, D), jnp.float32, -bound_in, bound_in)
    w_v = jax.random.uniform(k2, (1, D), jnp.float32, -bound_in, bound_in)
    w_out = jax.random.uniform(k3, (D, 2 * D), jnp.float32, -bound_out, bound_out)

    h_ref, attn_ref = _reference(x, ctx, w_in, w_v, w_out)

    # f32 MXU-operand path.  Fall back to default (double-buffered) weight
    # BlockSpecs if this jax build rejects pipeline_mode=pl.Buffered(1).
    params_f32 = prepare_params(w_in, w_v, w_out, dtype=jnp.float32)
    sbw = True
    try:
        h, attn = deep_attention(x, ctx, params_f32, single_buffer_weights=True)
        jax.block_until_ready((h, attn))
    except Exception:
        sbw = False
        h, attn = deep_attention(x, ctx, params_f32, single_buffer_weights=False)
        jax.block_until_ready((h, attn))

    assert h.shape == (B, D) and attn.shape == (B, L)
    assert jnp.allclose(h, h_ref, atol=2e-3, rtol=2e-3)
    assert jnp.allclose(attn, attn_ref, atol=2e-3, rtol=2e-3)
    assert jnp.allclose(jnp.sum(attn, axis=1), 1.0, atol=1e-4)

    # bf16 MXU-operand path (full MXU rate on v5e/v6e/v7x): bf16 operands for
    # every matmul, f32 accumulation, softmax / tanh stay f32.
    params_bf16 = prepare_params(w_in, w_v, w_out, dtype=jnp.bfloat16)
    h16, attn16 = deep_attention(x, ctx, params_bf16, single_buffer_weights=sbw)
    jax.block_until_ready((h16, attn16))
    assert h16.shape == (B, D) and attn16.shape == (B, L)
    assert bool(jnp.all(jnp.isfinite(h16))) and bool(jnp.all(jnp.isfinite(attn16)))
    assert jnp.allclose(h16, h_ref, atol=7e-2, rtol=7e-2)
    assert jnp.allclose(attn16, attn_ref, atol=7e-2, rtol=7e-2)

    print("KERNEL_OK")
</pallas_src>

<mosaic_0001>
module attributes {stable_mosaic.version = 11 : i64} {
  func.func @_deep_attention_kernel(%arg0: i32, %arg1: memref<8x128xf32, #tpu.memory_space<vmem>>, %arg2: memref<8x8x128xf32, #tpu.memory_space<vmem>>, %arg3: memref<128x128xf32, #tpu.memory_space<vmem>>, %arg4: memref<1x128xf32, #tpu.memory_space<vmem>>, %arg5: memref<128x128xf32, #tpu.memory_space<vmem>>, %arg6: memref<128x128xf32, #tpu.memory_space<vmem>>, %arg7: memref<8x128xf32, #tpu.memory_space<vmem>>, %arg8: memref<8x128xf32, #tpu.memory_space<vmem>>) attributes {dimension_semantics = [#tpu.dimension_semantics<parallel>], iteration_bounds = array<i64: 1>, scalar_prefetch = 0 : i64, scratch_operands = 0 : i64, tpu.core_type = #tpu.core_type<tc>, window_params = [{transform_indices = @transform_0, window_bounds = array<i64: 8, 128>}, {transform_indices = @transform_1, window_bounds = array<i64: 8, 8, 128>}, {pipeline_mode = #tpu.pipeline_mode<synchronous>, transform_indices = @transform_2, window_bounds = array<i64: 128, 128>}, {pipeline_mode = #tpu.pipeline_mode<synchronous>, transform_indices = @transform_3, window_bounds = array<i64: 1, 128>}, {pipeline_mode = #tpu.pipeline_mode<synchronous>, transform_indices = @transform_4, window_bounds = array<i64: 128, 128>}, {pipeline_mode = #tpu.pipeline_mode<synchronous>, transform_indices = @transform_5, window_bounds = array<i64: 128, 128>}, {transform_indices = @transform_6, window_bounds = array<i64: 8, 128>}, {transform_indices = @transform_7, window_bounds = array<i64: 8, 128>}]} {
    %c0 = arith.constant 0 : index
    %c0_0 = arith.constant 0 : index
    %0 = vector.load %arg1[%c0, %c0_0] : memref<8x128xf32, #tpu.memory_space<vmem>>, vector<8x128xf32>
    %c0_1 = arith.constant 0 : index
    %c0_2 = arith.constant 0 : index
    %c0_3 = arith.constant 0 : index
    %1 = vector.load %arg2[%c0_1, %c0_2, %c0_3] : memref<8x8x128xf32, #tpu.memory_space<vmem>>, vector<8x8x128xf32>
    %c0_4 = arith.constant 0 : index
    %c0_5 = arith.constant 0 : index
    %2 = vector.load %arg3[%c0_4, %c0_5] : memref<128x128xf32, #tpu.memory_space<vmem>>, vector<128x128xf32>
    %c0_6 = arith.constant 0 : index
    %c0_7 = arith.constant 0 : index
    %3 = vector.load %arg4[%c0_6, %c0_7] : memref<1x128xf32, #tpu.memory_space<vmem>>, vector<1x128xf32>
    %c0_8 = arith.constant 0 : index
    %c0_9 = arith.constant 0 : index
    %4 = vector.load %arg5[%c0_8, %c0_9] : memref<128x128xf32, #tpu.memory_space<vmem>>, vector<128x128xf32>
    %c0_10 = arith.constant 0 : index
    %c0_11 = arith.constant 0 : index
    %5 = vector.load %arg6[%c0_10, %c0_11] : memref<128x128xf32, #tpu.memory_space<vmem>>, vector<128x128xf32>
    %cst = arith.constant dense<0.000000e+00> : vector<8x128xf32>
    %6 = tpu.matmul %0, %2, %cst {dimension_numbers = #tpu.dot_dimension_numbers<[1], [0], [0], [1], [0, 0, 1, 1], [], []>} : vector<8x128xf32>, vector<128x128xf32>, vector<8x128xf32> -> vector<8x128xf32>
    %cst_12 = arith.constant 0.000000e+00 : f32
    %7 = vector.broadcast %cst_12 : f32 to vector<8x128xf32>
    %8 = arith.maximumf %6, %7 : vector<8x128xf32>
    %9 = vector.shape_cast %1 : vector<8x8x128xf32> to vector<64x128xf32>
    %cst_13 = arith.constant dense<0.000000e+00> : vector<64x128xf32>
    %10 = tpu.matmul %9, %2, %cst_13 {dimension_numbers = #tpu.dot_dimension_numbers<[1], [0], [0], [1], [0, 0, 1, 1], [], []>} : vector<64x128xf32>, vector<128x128xf32>, vector<64x128xf32> -> vector<64x128xf32>
    %cst_14 = arith.constant 0.000000e+00 : f32
    %11 = vector.broadcast %cst_14 : f32 to vector<64x128xf32>
    %12 = arith.maximumf %10, %11 : vector<64x128xf32>
    %13 = vector.shape_cast %12 : vector<64x128xf32> to vector<8x8x128xf32>
    %14 = vector.broadcast %3 : vector<1x128xf32> to vector<8x128xf32>
    %15 = arith.mulf %8, %14 : vector<8x128xf32>
    %16 = vector.shape_cast %15 : vector<8x128xf32> to vector<8x1x128xf32>
    "tpu.trace_start"() <{level = 10 : i32, message = "bqd,bkd->bqk"}> : () -> ()
    %cst_15 = arith.constant dense<0.000000e+00> : vector<8x1x8xf32>
    %17 = tpu.matmul %16, %13, %cst_15 {dimension_numbers = #tpu.dot_dimension_numbers<[2], [2], [1], [1], [0, 0, 0, 1, 1, 1], [0], [0]>} : vector<8x1x128xf32>, vector<8x8x128xf32>, vector<8x1x8xf32> -> vector<8x1x8xf32>
    "tpu.trace_stop"() : () -> ()
    %cst_16 = arith.constant dense<0xFF800000> : vector<8x1xf32>
    %18 = vector.multi_reduction <maximumf>, %17, %cst_16 [2] : vector<8x1x8xf32> to vector<8x1xf32>
    %19 = vector.shape_cast %18 : vector<8x1xf32> to vector<8x1x1xf32>
    %20 = vector.broadcast %19 : vector<8x1x1xf32> to vector<8x1x8xf32>
    %21 = arith.subf %17, %20 : vector<8x1x8xf32>
    %22 = math.exp %21 : vector<8x1x8xf32>
    %cst_17 = arith.constant dense<0.000000e+00> : vector<8x1xf32>
    %23 = vector.multi_reduction <add>, %22, %cst_17 [2] : vector<8x1x8xf32> to vector<8x1xf32>
    %24 = vector.shape_cast %23 : vector<8x1xf32> to vector<8x1x1xf32>
    %cst_18 = arith.constant 1.000000e+00 : f32
    %25 = vector.broadcast %cst_18 : f32 to vector<8x1x1xf32>
    %26 = arith.divf %25, %24 : vector<8x1x1xf32>
    %27 = vector.broadcast %26 : vector<8x1x1xf32> to vector<8x1x8xf32>
    %28 = arith.mulf %22, %27 : vector<8x1x8xf32>
    %29 = vector.shape_cast %28 : vector<8x1x8xf32> to vector<8x8xf32>
    %cst_19 = arith.constant 0.000000e+00 : f32
    %30 = vector.broadcast %cst_19 : f32 to vector<8x128xf32>
    %c0_20 = arith.constant 0 : index
    %c0_21 = arith.constant 0 : index
    %31 = vector.load %arg8[%c0_20, %c0_21] : memref<8x128xf32, #tpu.memory_space<vmem>>, vector<8x128xf32>
    tpu.vector_store %arg8[%c0_20, %c0_21], %30 {strides = array<i32>} : memref<8x128xf32, #tpu.memory_space<vmem>>, vector<8x128xf32>,
    %c0_22 = arith.constant 0 : index
    %c0_23 = arith.constant 0 : index
    %32 = vector.load %arg8[%c0_22, %c0_23] : memref<8x128xf32, #tpu.memory_space<vmem>>, vector<8x8xf32>
    tpu.vector_store %arg8[%c0_22, %c0_23], %29 {strides = array<i32>} : memref<8x128xf32, #tpu.memory_space<vmem>>, vector<8x8xf32>,
    "tpu.trace_start"() <{level = 10 : i32, message = "bqk,bkd->bqd"}> : () -> ()
    %cst_24 = arith.constant dense<0.000000e+00> : vector<8x1x128xf32>
    %33 = tpu.matmul %28, %1, %cst_24 {dimension_numbers = #tpu.dot_dimension_numbers<[2], [1], [1], [2], [0, 0, 0, 1, 1, 2], [0], [0]>} : vector<8x1x8xf32>, vector<8x8x128xf32>, vector<8x1x128xf32> -> vector<8x1x128xf32>
    "tpu.trace_stop"() : () -> ()
    %34 = vector.shape_cast %33 : vector<8x1x128xf32> to vector<8x128xf32>
    %cst_25 = arith.constant dense<0.000000e+00> : vector<8x128xf32>
    %35 = tpu.matmul %34, %4, %cst_25 {dimension_numbers = #tpu.dot_dimension_numbers<[1], [0], [0], [1], [0, 0, 1, 1], [], []>} : vector<8x128xf32>, vector<128x128xf32>, vector<8x128xf32> -> vector<8x128xf32>
    %cst_26 = arith.constant dense<0.000000e+00> : vector<8x128xf32>
    %36 = tpu.matmul %0, %5, %cst_26 {dimension_numbers = #tpu.dot_dimension_numbers<[1], [0], [0], [1], [0, 0, 1, 1], [], []>} : vector<8x128xf32>, vector<128x128xf32>, vector<8x128xf32> -> vector<8x128xf32>
    %37 = arith.addf %35, %36 : vector<8x128xf32>
    %38 = math.tanh %37 : vector<8x128xf32>
    %c0_27 = arith.constant 0 : index
    %c0_28 = arith.constant 0 : index
    %39 = vector.load %arg7[%c0_27, %c0_28] : memref<8x128xf32, #tpu.memory_space<vmem>>, vector<8x128xf32>
    tpu.vector_store %arg7[%c0_27, %c0_28], %38 {strides = array<i32>} : memref<8x128xf32, #tpu.memory_space<vmem>>, vector<8x128xf32>,
    return
  }
  func.func @transform_0(%arg0: i32) -> (i32, i32) {
    %c0_i32 = arith.constant 0 : i32
    %c0_i32_0 = arith.constant 0 : i32
    return %arg0, %c0_i32 : i32, i32
  }
  func.func @transform_1(%arg0: i32) -> (i32, i32, i32) {
    %c0_i32 = arith.constant 0 : i32
    %c0_i32_0 = arith.constant 0 : i32
    %c0_i32_1 = arith.constant 0 : i32
    return %arg0, %c0_i32, %c0_i32_0 : i32, i32, i32
  }
  func.func @transform_2(%arg0: i32) -> (i32, i32) {
    %c0_i32 = arith.constant 0 : i32
    %c0_i32_0 = arith.constant 0 : i32
    %c0_i32_1 = arith.constant 0 : i32
    return %c0_i32, %c0_i32_0 : i32, i32
  }
  func.func @transform_3(%arg0: i32) -> (i32, i32) {
    %c0_i32 = arith.constant 0 : i32
    %c0_i32_0 = arith.constant 0 : i32
    %c0_i32_1 = arith.constant 0 : i32
    return %c0_i32, %c0_i32_0 : i32, i32
  }
  func.func @transform_4(%arg0: i32) -> (i32, i32) {
    %c0_i32 = arith.constant 0 : i32
    %c0_i32_0 = arith.constant 0 : i32
    %c0_i32_1 = arith.constant 0 : i32
    return %c0_i32, %c0_i32_0 : i32, i32
  }
  func.func @transform_5(%arg0: i32) -> (i32, i32) {
    %c0_i32 = arith.constant 0 : i32
    %c0_i32_0 = arith.constant 0 : i32
    %c0_i32_1 = arith.constant 0 : i32
    return %c0_i32, %c0_i32_0 : i32, i32
  }
  func.func @transform_6(%arg0: i32) -> (i32, i32) {
    %c0_i32 = arith.constant 0 : i32
    %c0_i32_0 = arith.constant 0 : i32
    return %arg0, %c0_i32 : i32, i32
  }
  func.func @transform_7(%arg0: i32) -> (i32, i32) {
    %c0_i32 = arith.constant 0 : i32
    %c0_i32_0 = arith.constant 0 : i32
    return %arg0, %c0_i32 : i32, i32
  }
}

module attributes {stable_mosaic.version = 11 : i64} {
  func.func @_deep_attention_kernel(%arg0: i32, %arg1: memref<8x128xf32, #tpu.memory_space<vmem>>, %arg2: memref<8x8x128xf32, #tpu.memory_space<vmem>>, %arg3: memref<128x128xf32, #tpu.memory_space<vmem>>, %arg4: memref<1x128xf32, #tpu.memory_space<vmem>>, %arg5: memref<128x128xf32, #tpu.memory_space<vmem>>, %arg6: memref<128x128xf32, #tpu.memory_space<vmem>>, %arg7: memref<8x128xf32, #tpu.memory_space<vmem>>, %arg8: memref<8x128xf32, #tpu.memory_space<vmem>>) attributes {dimension_semantics = [#tpu.dimension_semantics<parallel>], iteration_bounds = array<i64: 1>, scalar_prefetch = 0 : i64, scratch_operands = 0 : i64, tpu.core_type = #tpu.core_type<tc>, window_params = [{transform_indices = @transform_0, window_bounds = array<i64: 8, 128>}, {transform_indices = @transform_1, window_bounds = array<i64: 8, 8, 128>}, {pipeline_mode = #tpu.pipeline_mode<synchronous>, transform_indices = @transform_2, window_bounds = array<i64: 128, 128>}, {pipeline_mode = #tpu.pipeline_mode<synchronous>, transform_indices = @transform_3, window_bounds = array<i64: 1, 128>}, {pipeline_mode = #tpu.pipeline_mode<synchronous>, transform_indices = @transform_4, window_bounds = array<i64: 128, 128>}, {pipeline_mode = #tpu.pipeline_mode<synchronous>, transform_indices = @transform_5, window_bounds = array<i64: 128, 128>}, {transform_indices = @transform_6, window_bounds = array<i64: 8, 128>}, {transform_indices = @transform_7, window_bounds = array<i64: 8, 128>}]} {
    %c0 = arith.constant 0 : index
    %c0_0 = arith.constant 0 : index
    %0 = vector.load %arg1[%c0, %c0_0] : memref<8x128xf32, #tpu.memory_space<vmem>>, vector<8x128xf32>
    %c0_1 = arith.constant 0 : index
    %c0_2 = arith.constant 0 : index
    %c0_3 = arith.constant 0 : index
    %1 = vector.load %arg2[%c0_1, %c0_2, %c0_3] : memref<8x8x128xf32, #tpu.memory_space<vmem>>, vector<8x8x128xf32>
    %c0_4 = arith.constant 0 : index
    %c0_5 = arith.constant 0 : index
    %2 = vector.load %arg3[%c0_4, %c0_5] : memref<128x128xf32, #tpu.memory_space<vmem>>, vector<128x128xf32>
    %c0_6 = arith.constant 0 : index
    %c0_7 = arith.constant 0 : index
    %3 = vector.load %arg4[%c0_6, %c0_7] : memref<1x128xf32, #tpu.memory_space<vmem>>, vector<1x128xf32>
    %c0_8 = arith.constant 0 : index
    %c0_9 = arith.constant 0 : index
    %4 = vector.load %arg5[%c0_8, %c0_9] : memref<128x128xf32, #tpu.memory_space<vmem>>, vector<128x128xf32>
    %c0_10 = arith.constant 0 : index
    %c0_11 = arith.constant 0 : index
    %5 = vector.load %arg6[%c0_10, %c0_11] : memref<128x128xf32, #tpu.memory_space<vmem>>, vector<128x128xf32>
    %cst = arith.constant dense<0.000000e+00> : vector<8x128xf32>
    %6 = tpu.matmul %0, %2, %cst {dimension_numbers = #tpu.dot_dimension_numbers<[1], [0], [0], [1], [0, 0, 1, 1], [], []>} : vector<8x128xf32>, vector<128x128xf32>, vector<8x128xf32> -> vector<8x128xf32>
    %cst_12 = arith.constant 0.000000e+00 : f32
    %7 = vector.broadcast %cst_12 : f32 to vector<8x128xf32>
    %8 = arith.maximumf %6, %7 : vector<8x128xf32>
    %9 = vector.shape_cast %1 : vector<8x8x128xf32> to vector<64x128xf32>
    %cst_13 = arith.constant dense<0.000000e+00> : vector<64x128xf32>
    %10 = tpu.matmul %9, %2, %cst_13 {dimension_numbers = #tpu.dot_dimension_numbers<[1], [0], [0], [1], [0, 0, 1, 1], [], []>} : vector<64x128xf32>, vector<128x128xf32>, vector<64x128xf32> -> vector<64x128xf32>
    %cst_14 = arith.constant 0.000000e+00 : f32
    %11 = vector.broadcast %cst_14 : f32 to vector<64x128xf32>
    %12 = arith.maximumf %10, %11 : vector<64x128xf32>
    %13 = vector.shape_cast %12 : vector<64x128xf32> to vector<8x8x128xf32>
    %14 = vector.broadcast %3 : vector<1x128xf32> to vector<8x128xf32>
    %15 = arith.mulf %8, %14 : vector<8x128xf32>
    %16 = vector.shape_cast %15 : vector<8x128xf32> to vector<8x1x128xf32>
    "tpu.trace_start"() <{level = 10 : i32, message = "bqd,bkd->bqk"}> : () -> ()
    %cst_15 = arith.constant dense<0.000000e+00> : vector<8x1x8xf32>
    %17 = tpu.matmul %16, %13, %cst_15 {dimension_numbers = #tpu.dot_dimension_numbers<[2], [2], [1], [1], [0, 0, 0, 1, 1, 1], [0], [0]>} : vector<8x1x128xf32>, vector<8x8x128xf32>, vector<8x1x8xf32> -> vector<8x1x8xf32>
    "tpu.trace_stop"() : () -> ()
    %cst_16 = arith.constant dense<0xFF800000> : vector<8x1xf32>
    %18 = vector.multi_reduction <maximumf>, %17, %cst_16 [2] : vector<8x1x8xf32> to vector<8x1xf32>
    %19 = vector.shape_cast %18 : vector<8x1xf32> to vector<8x1x1xf32>
    %20 = vector.broadcast %19 : vector<8x1x1xf32> to vector<8x1x8xf32>
    %21 = arith.subf %17, %20 : vector<8x1x8xf32>
    %22 = math.exp %21 : vector<8x1x8xf32>
    %cst_17 = arith.constant dense<0.000000e+00> : vector<8x1xf32>
    %23 = vector.multi_reduction <add>, %22, %cst_17 [2] : vector<8x1x8xf32> to vector<8x1xf32>
    %24 = vector.shape_cast %23 : vector<8x1xf32> to vector<8x1x1xf32>
    %cst_18 = arith.constant 1.000000e+00 : f32
    %25 = vector.broadcast %cst_18 : f32 to vector<8x1x1xf32>
    %26 = arith.divf %25, %24 : vector<8x1x1xf32>
    %27 = vector.broadcast %26 : vector<8x1x1xf32> to vector<8x1x8xf32>
    %28 = arith.mulf %22, %27 : vector<8x1x8xf32>
    %29 = vector.shape_cast %28 : vector<8x1x8xf32> to vector<8x8xf32>
    %cst_19 = arith.constant 0.000000e+00 : f32
    %30 = vector.broadcast %cst_19 : f32 to vector<8x128xf32>
    %c0_20 = arith.constant 0 : index
    %c0_21 = arith.constant 0 : index
    %31 = vector.load %arg8[%c0_20, %c0_21] : memref<8x128xf32, #tpu.memory_space<vmem>>, vector<8x128xf32>
    tpu.vector_store %arg8[%c0_20, %c0_21], %30 {strides = array<i32>} : memref<8x128xf32, #tpu.memory_space<vmem>>, vector<8x128xf32>,
    %c0_22 = arith.constant 0 : index
    %c0_23 = arith.constant 0 : index
    %32 = vector.load %arg8[%c0_22, %c0_23] : memref<8x128xf32, #tpu.memory_space<vmem>>, vector<8x8xf32>
    tpu.vector_store %arg8[%c0_22, %c0_23], %29 {strides = array<i32>} : memref<8x128xf32, #tpu.memory_space<vmem>>, vector<8x8xf32>,
    "tpu.trace_start"() <{level = 10 : i32, message = "bqk,bkd->bqd"}> : () -> ()
    %cst_24 = arith.constant dense<0.000000e+00> : vector<8x1x128xf32>
    %33 = tpu.matmul %28, %1, %cst_24 {dimension_numbers = #tpu.dot_dimension_numbers<[2], [1], [1], [2], [0, 0, 0, 1, 1, 2], [0], [0]>} : vector<8x1x8xf32>, vector<8x8x128xf32>, vector<8x1x128xf32> -> vector<8x1x128xf32>
    "tpu.trace_stop"() : () -> ()
    %34 = vector.shape_cast %33 : vector<8x1x128xf32> to vector<8x128xf32>
    %cst_25 = arith.constant dense<0.000000e+00> : vector<8x128xf32>
    %35 = tpu.matmul %34, %4, %cst_25 {dimension_numbers = #tpu.dot_dimension_numbers<[1], [0], [0], [1], [0, 0, 1, 1], [], []>} : vector<8x128xf32>, vector<128x128xf32>, vector<8x128xf32> -> vector<8x128xf32>
    %cst_26 = arith.constant dense<0.000000e+00> : vector<8x128xf32>
    %36 = tpu.matmul %0, %5, %cst_26 {dimension_numbers = #tpu.dot_dimension_numbers<[1], [0], [0], [1], [0, 0, 1, 1], [], []>} : vector<8x128xf32>, vector<128x128xf32>, vector<8x128xf32> -> vector<8x128xf32>
    %37 = arith.addf %35, %36 : vector<8x128xf32>
    %38 = math.tanh %37 : vector<8x128xf32>
    %c0_27 = arith.constant 0 : index
    %c0_28 = arith.constant 0 : index
    %39 = vector.load %arg7[%c0_27, %c0_28] : memref<8x128xf32, #tpu.memory_space<vmem>>, vector<8x128xf32>
    tpu.vector_store %arg7[%c0_27, %c0_28], %38 {strides = array<i32>} : memref<8x128xf32, #tpu.memory_space<vmem>>, vector<8x128xf32>,
    return
  }
  func.func @transform_0(%arg0: i32) -> (i32, i32) {
    %c0_i32 = arith.constant 0 : i32
    %c0_i32_0 = arith.constant 0 : i32
    return %arg0, %c0_i32 : i32, i32
  }
  func.func @transform_1(%arg0: i32) -> (i32, i32, i32) {
    %c0_i32 = arith.constant 0 : i32
    %c0_i32_0 = arith.constant 0 : i32
    %c0_i32_1 = arith.constant 0 : i32
    return %arg0, %c0_i32, %c0_i32_0 : i32, i32, i32
  }
  func.func @transform_2(%arg0: i32) -> (i32, i32) {
    %c0_i32 = arith.constant 0 : i32
    %c0_i32_0 = arith.constant 0 : i32
    %c0_i32_1 = arith.constant 0 : i32
    return %c0_i32, %c0_i32_0 : i32, i32
  }
  func.func @transform_3(%arg0: i32) -> (i32, i32) {
    %c0_i32 = arith.constant 0 : i32
    %c0_i32_0 = arith.constant 0 : i32
    %c0_i32_1 = arith.constant 0 : i32
    return %c0_i32, %c0_i32_0 : i32, i32
  }
  func.func @transform_4(%arg0: i32) -> (i32, i32) {
    %c0_i32 = arith.constant 0 : i32
    %c0_i32_0 = arith.constant 0 : i32
    %c0_i32_1 = arith.constant 0 : i32
    return %c0_i32, %c0_i32_0 : i32, i32
  }
  func.func @transform_5(%arg0: i32) -> (i32, i32) {
    %c0_i32 = arith.constant 0 : i32
    %c0_i32_0 = arith.constant 0 : i32
    %c0_i32_1 = arith.constant 0 : i32
    return %c0_i32, %c0_i32_0 : i32, i32
  }
  func.func @transform_6(%arg0: i32) -> (i32, i32) {
    %c0_i32 = arith.constant 0 : i32
    %c0_i32_0 = arith.constant 0 : i32
    return %arg0, %c0_i32 : i32, i32
  }
  func.func @transform_7(%arg0: i32) -> (i32, i32) {
    %c0_i32 = arith.constant 0 : i32
    %c0_i32_0 = arith.constant 0 : i32
    return %arg0, %c0_i32 : i32, i32
  }
}

</mosaic_0001>

<bundles_post_ra>
// kernel: deep_attention.1
= control target key start
LH: loop header
LB: loop body
LE: loop exit
PB: predicated region body
PF: predicated region fallthrough
CT: control target
= control target key end

     0   :  { %13 = vsyncpa [#allocation3], 0  ;;  %s2551_s0 = inlined_call_operand.vmem [shape: f32[8,128], index: 0, kind: input, shape index: {}]   ;;  %s2552_s1 = inlined_call_operand.vmem [shape: f32[8,8,128], index: 1, kind: input, shape index: {}]   ;;  %s2553_s2 = inlined_call_operand.hbm [shape: f32[128,128], index: 2, kind: input, shape index: {}]   ;;  %s2554_s3 = inlined_call_operand.vmem [shape: f32[1,128], index: 3, kind: input, shape index: {}]   ;;  %s2555_s4 = inlined_call_operand.hbm [shape: f32[128,128], index: 4, kind: input, shape index: {}]   ;;  %s2556_s5 = inlined_call_operand.hbm [shape: f32[128,128], index: 5, kind: input, shape index: {}]   ;;  %s2557_s6 = inlined_call_operand.vmem [shape: f32[8,128], index: 6, kind: output, shape index: {0}]   ;;  %s2558_s7 = inlined_call_operand.vmem [shape: f32[8,128], index: 7, kind: output, shape index: {1}]  }
   0x1   :  { %14 = vsyncpa [#allocation5], 0  ;;  %s2265_s24 = smov [#allocation4]   ;;  %s2266_s26 = smov [#allocation2]  }
   0x2   :  { %s38_s25 = sshll.u32 %s2265_s24, 4  ;;  %s24_s27 = sshll.u32 %s2266_s26, 4  ;;  %s39_s25 = int_to_ptr.vmem [resolvable:$true] %s38_s25  ;;  %s25_s27 = int_to_ptr.vmem [resolvable:$true] %s24_s27 }
   0x3   :  { %s2209_s28 = scalar_lea.vmem %s39_s25, 2048  ;;  %p2214_p1 = scmp.lt.s32.totalorder %s39_s25, %s39_s25 }
   0x4   :  { %p2210_p0 = scmp.ne.s32.totalorder %s39_s25, %s2209_s28  ;;  %p2215_p2 = scmp.lt.s32.totalorder %s2209_s28, %s2209_s28 }
   0x6   :  { %p2216_p3 = por %p2215_p2, %p2214_p1 }
   0x8   :  { %p2217_p4 = pnand %p2216_p3, %p2210_p0 }
   0xa   :  { %2220 = shalt.err (!%p2217_p4)
}
   0xb   :  { %s2267_s29 = smov 128   ;;  %s2268_s30 = smov 8  }
   0xc   :  { %44 = dma.hbm_to_vmem [thread:$0]  %s2555_s4, 2048, %s39_s25, [#allocation5], %s2267_s29, %s2267_s29, %s2268_s30  }
   0xd   :  { %s2229_s10 = scalar_lea.vmem %s25_s27, 2048  ;;  %p2234_p6 = scmp.lt.s32.totalorder %s25_s27, %s25_s27 }
   0xe   :  { %p2230_p5 = scmp.ne.s32.totalorder %s25_s27, %s2229_s10  ;;  %p2235_p7 = scmp.lt.s32.totalorder %s2229_s10, %s2229_s10 }
  0x10   :  { %p2236_p8 = por %p2235_p7, %p2234_p6 }
  0x12   :  { %p2237_p9 = pnand %p2236_p8, %p2230_p5 }
  0x14   :  { %2240 = shalt.err (!%p2237_p9)
}
  0x15   :  { %30 = dma.hbm_to_vmem [thread:$0]  %s2553_s2, 2048, %s25_s27, [#allocation3], %s2267_s29, %s2267_s29, %s2268_s30  }
  0x16   :  { %s2269_s13 = smov [#allocation6]  }
  0x17   :  { %s50_s14 = sshll.u32 %s2269_s13, 4  ;;  %s51_s14 = int_to_ptr.vmem [resolvable:$true] %s50_s14 }
  0x18   :  { %s2249_s15 = scalar_lea.vmem %s51_s14, 2048  ;;  %p2254_p11 = scmp.lt.s32.totalorder %s51_s14, %s51_s14 }
  0x19   :  { %p2250_p10 = scmp.ne.s32.totalorder %s51_s14, %s2249_s15  ;;  %p2255_p12 = scmp.lt.s32.totalorder %s2249_s15, %s2249_s15 }
  0x1b   :  { %p2256_p13 = por %p2255_p12, %p2254_p11 }
  0x1d   :  { %p2257_p0 = pnand %p2256_p13, %p2250_p10 }
  0x1f   :  { %2260 = shalt.err (!%p2257_p0)
}
  0x20   :  { %56 = dma.hbm_to_vmem [thread:$0]  %s2556_s5, 2048, %s51_s14, [#allocation5], %s2267_s29, %s2267_s29, %s2268_s30  }
  0x21   :  { %2261 = dma.done.wait [#allocation3], 2048  }
  0x22   :  { %2262 = vsyncadd [#allocation3], 4294965248 }
  0x23   :  { %2263 = dma.done.wait [#allocation5], 4096  }
  0x24   :  { %2264 = vsyncadd [#allocation5], 4294963200  ;;  %v2270_v0 = vmov 0.0   ;;  %vm2271_vm0 = vmmov 0   ;;  %v90_v1 = vld [vmem:[#allocation2 + $0x78] sm:$0xff]  ;;  %v89_v2 = vld [vmem:[#allocation2 + $0x70] sm:$0xff]  ;;  %v320_v28 = vlaneseq }
  0x25   :  { %1930 = vmatprep.subr.mxu0 %v2270_v0  ;;  %1030 = vst [vmem:[%s2558_s7] sm:$0xff] %v2270_v0  ;;  %1962 = vmatprep.mubr.msk.f32.mxu0 %vm2271_vm0, %v2270_v0  ;;  %v88_v3 = vld [vmem:[#allocation2 + $0x68] sm:$0xff]  ;;  %v87_v4 = vld [vmem:[#allocation2 + $0x60] sm:$0xff]  ;;  %v86_v5 = vld [vmem:[#allocation2 + $0x58] sm:$0xff]  ;;  %v2272_v26 = vmov 1966171168   ;;  %vm933_vm1 = vcmask 57344  }
  0x26   :  { %1931 = vmatpush3.msra.mxu0 %v90_v1  ;;  %1965 = vmatprep.subr.mxu1 %v90_v1  ;;  %v85_v6 = vld [vmem:[#allocation2 + $0x50] sm:$0xff]  ;;  %v84_v7 = vld [vmem:[#allocation2 + $0x48] sm:$0xff]  ;;  %v83_v8 = vld [vmem:[#allocation2 + $0x40] sm:$0xff]  ;;  %v318_v27 = vunpack.c.l.s4 %v2272_v26  ;;  %v321_v30 = vshrl.u32 %v320_v28, 7  ;;  %vm1061_vm2 = vcmask 64512   ;;  %vm1040_vm3 = vcmask 1041409  }
  0x27   :  { %1932 = vmatprep.subr.mxu0 %v2270_v0  ;;  %1966 = vmatpush3.msra.mxu1 %v90_v1  ;;  %v82_v9 = vld [vmem:[#allocation2 + $0x38] sm:$0xff]  ;;  %v81_v10 = vld [vmem:[#allocation2 + $0x30] sm:$0xff]  ;;  %v80_v11 = vld [vmem:[#allocation2 + $0x28] sm:$0xff]  ;;  %vm1043_vm4 = vcmask 1042434   ;;  %vm1046_vm5 = vcmask 1043459   ;;  %vm1049_vm6 = vcmask 1044484  }
  0x28   :  { %1933 = vmatpush3.msra.mxu0 %v89_v2  ;;  %1967 = vmatprep.subr.mxu1 %v89_v2  ;;  %v79_v12 = vld [vmem:[#allocation2 + $0x20] sm:$0xff]  ;;  %v78_v13 = vld [vmem:[#allocation2 + $0x18] sm:$0xff]  ;;  %v77_v14 = vld [vmem:[#allocation2 + $0x10] sm:$0xff]  ;;  %v319_v29 = vunpack.c.0.s8 %v318_v27  ;;  %vm1052_vm7 = vcmask 1045509   ;;  %vm1055_vm8 = vcmask 1046534   ;;  %vm1058_vm9 = vcmask 1047559  }
  0x29   :  { %1934 = vmatprep.subr.mxu0 %v2270_v0  ;;  %1968 = vmatpush3.msra.mxu1 %v89_v2  ;;  %v76_v15 = vld [vmem:[#allocation2 + $0x8] sm:$0xff]  ;;  %v75_v16 = vld [vmem:[#allocation2] sm:$0xff]  ;;  %v2363_v20 = vld [vmem:[%s2552_s1 + $0x10] sm:$0xff] }
  0x2a   :  { %1935 = vmatpush3.msra.mxu0 %v88_v3  ;;  %1969 = vmatprep.subr.mxu1 %v88_v3  ;;  %v2346_v17 = vld [vmem:[%s2551_s0] sm:$0xff]  ;;  %v2357_v19 = vld [vmem:[%s2552_s1 + $0x8] sm:$0xff]  ;;  %v2374_v21 = vld [vmem:[%s2552_s1 + $0x18] sm:$0xff]  ;;  %v322_v34 = vsub.s32 %v319_v29, %v321_v30 }
  0x2b   :  { %1936 = vmatprep.subr.mxu0 %v2270_v0  ;;  %1970 = vmatpush3.msra.mxu1 %v88_v3  ;;  %v2352_v18 = vld [vmem:[%s2552_s1] sm:$0xff]  ;;  %v2387_v23 = vld [vmem:[%s2552_s1 + $0x28] sm:$0xff]  ;;  %v2392_v24 = vld [vmem:[%s2552_s1 + $0x30] sm:$0xff] }
  0x2c   :  { %1937 = vmatpush3.msra.mxu0 %v87_v4  ;;  %1971 = vmatprep.subr.mxu1 %v87_v4  ;;  %v2380_v22 = vld [vmem:[%s2552_s1 + $0x20] sm:$0xff]  ;;  %v2399_v25 = vld [vmem:[%s2552_s1 + $0x38] sm:$0xff] }
  0x2d   :  { %1938 = vmatprep.subr.mxu0 %v2270_v0  ;;  %1972 = vmatpush3.msra.mxu1 %v87_v4  ;;  %v1814_v31 = vld [vmem:[%s2554_s3] ss:$0 sm:$0xff] }
  0x2e   :  { %1939 = vmatpush3.msra.mxu0 %v86_v5  ;;  %1973 = vmatprep.subr.mxu1 %v86_v5 }
  0x2f   :  { %1940 = vmatprep.subr.mxu0 %v2270_v0  ;;  %1974 = vmatpush3.msra.mxu1 %v86_v5 }
  0x30   :  { %1941 = vmatpush3.msra.mxu0 %v85_v6  ;;  %1975 = vmatprep.subr.mxu1 %v85_v6 }
  0x31   :  { %1942 = vmatprep.subr.mxu0 %v2270_v0  ;;  %1976 = vmatpush3.msra.mxu1 %v85_v6 }
  0x32   :  { %1943 = vmatpush3.msra.mxu0 %v84_v7  ;;  %1977 = vmatprep.subr.mxu1 %v84_v7 }
  0x33   :  { %1944 = vmatprep.subr.mxu0 %v2270_v0  ;;  %1978 = vmatpush3.msra.mxu1 %v84_v7 }
  0x34   :  { %1945 = vmatpush3.msra.mxu0 %v83_v8  ;;  %1979 = vmatprep.subr.mxu1 %v83_v8 }
  0x35   :  { %1946 = vmatprep.subr.mxu0 %v2270_v0  ;;  %1980 = vmatpush3.msra.mxu1 %v83_v8 }
  0x36   :  { %1947 = vmatpush3.msra.mxu0 %v82_v9  ;;  %1981 = vmatprep.subr.mxu1 %v82_v9 }
  0x37   :  { %1948 = vmatprep.subr.mxu0 %v2270_v0  ;;  %1982 = vmatpush3.msra.mxu1 %v82_v9 }
  0x38   :  { %1949 = vmatpush3.msra.mxu0 %v81_v10  ;;  %1983 = vmatprep.subr.mxu1 %v81_v10 }
  0x39   :  { %1950 = vmatprep.subr.mxu0 %v2270_v0  ;;  %1984 = vmatpush3.msra.mxu1 %v81_v10 }
  0x3a   :  { %1951 = vmatpush3.msra.mxu0 %v80_v11  ;;  %1985 = vmatprep.subr.mxu1 %v80_v11 }
  0x3b   :  { %1952 = vmatprep.subr.mxu0 %v2270_v0  ;;  %1986 = vmatpush3.msra.mxu1 %v80_v11 }
  0x3c   :  { %1953 = vmatpush3.msra.mxu0 %v79_v12  ;;  %1987 = vmatprep.subr.mxu1 %v79_v12 }
  0x3d   :  { %1954 = vmatprep.subr.mxu0 %v2270_v0  ;;  %1988 = vmatpush3.msra.mxu1 %v79_v12 }
  0x3e   :  { %1955 = vmatpush3.msra.mxu0 %v78_v13  ;;  %1989 = vmatprep.subr.mxu1 %v78_v13 }
  0x3f   :  { %1956 = vmatprep.subr.mxu0 %v2270_v0  ;;  %1990 = vmatpush3.msra.mxu1 %v78_v13 }
  0x40   :  { %1957 = vmatpush3.msra.mxu0 %v77_v14  ;;  %1991 = vmatprep.subr.mxu1 %v77_v14 }
  0x41   :  { %1958 = vmatprep.subr.mxu0 %v2270_v0  ;;  %1992 = vmatpush3.msra.mxu1 %v77_v14 }
  0x42   :  { %1959 = vmatpush3.msra.mxu0 %v76_v15  ;;  %1993 = vmatprep.subr.mxu1 %v76_v15 }
  0x43   :  { %1960 = vmatprep.subr.mxu0 %v2270_v0  ;;  %1994 = vmatpush3.msra.mxu1 %v76_v15 }
  0x44   :  { %1961 = vmatpush3.msra.mxu0 %v75_v16  ;;  %1995 = vmatprep.subr.mxu1 %v75_v16 }
  0x45   :  { %1963 = vmatmul.mubr.f32.vlgmr.msra.gmra.mxu0 %v2346_v17  ;;  %1996 = vmatpush3.msra.mxu1 %v75_v16 }
  0x46   :  { %1997 = vmatprep.mubr.f32.mxu1 %v2352_v18  ;;  %2009 = vmatprep.subr.mxu0 %v2270_v0 }
  0x47   :  { %1998 = vmatmul.mubr.f32.vlgmr.msra.gmra.mxu1 %v2357_v19  ;;  %2011 = vmatprep.mubr.msk.f32.mxu0 %vm2271_vm0, %v2270_v0 }
  0x48   :  { %2000 = vmatprep.mubr.f32.mxu1 %v2363_v20  ;;  %2029 = vmatprep.subr.mxu1 %v2270_v0 }
  0x4b   :  { %2001 = vmatmul.mubr.f32.gmra.mxu1 %v2374_v21 }
  0x4c   :  { %2003 = vmatprep.mubr.f32.mxu1 %v2380_v22 }
  0x4f   :  { %2004 = vmatmul.mubr.f32.gmra.mxu1 %v2387_v23 }
  0x50   :  { %2006 = vmatprep.mubr.f32.mxu1 %v2392_v24 }
  0x53   :  { %2007 = vmatmul.mubr.f32.gmra.mxu1 %v2399_v25 }
  0x54   :  { %2031 = vmatprep.mubr.msk.f32.mxu1 %vm2271_vm0, %v2270_v0 }
 0x105   :  { %v190_v32 = vpop.f32.mrf.mxu0 }
 0x106   :  { %v194_v33 = vmax.f32 %v190_v32, 0.0 }
 0x107   :  { %v1999_v35 = vpop.f32.mrf.mxu1  ;;  %v1964_v36 = vpop.f32.mrf.mxu0 }
 0x108   :  { %v314_v37 = vmul.f32 %v1814_v31, %v194_v33  ;;  %v301_v46 = vmax.f32 %v1999_v35, 0.0 }
 0x109   :  { %v261_v38 = vpop.f32.mrf.mxu1 }
 0x10a   :  { %v323_v39 = vrot.slane %v314_v37, %v322_v34  ;;  %v300_v40 = vmax.f32 %v261_v38, 0.0  ;;  %v316_v43 = vcombine.high %v314_v37, %v314_v37 }
 0x10b   :  { %v2002_v41 = vpop.f32.mrf.mxu1 }
 0x10c   :  { %v339_v42 = vrot.slane %v323_v39, %v322_v34  ;;  %2010 = vmatpush3.xpose.msra.mxu0 %v300_v40  ;;  %v331_v44 = vcombine.high %v323_v39, %v323_v39  ;;  %v330_v48 = vrot.slane %v316_v43, %v322_v34  ;;  %v303_v57 = vmax.f32 %v2002_v41, 0.0 }
 0x10d   :  { %v271_v45 = vpop.f32.mrf.mxu1  ;;  %2014 = vmatprep.subr.mxu0 %v2270_v0 }
 0x10e   :  { %v353_v50 = vrot.slane %v331_v44, %v322_v34  ;;  %v302_v51 = vmax.f32 %v271_v45, 0.0  ;;  %v346_v54 = vrot.slane %v330_v48, %v322_v34  ;;  %v361_v56 = vcombine.high %v339_v42, %v339_v42 }
 0x10f   :  { %v2005_v47 = vpop.f32.mrf.mxu1  ;;  %2012 = vmatmul.mubr.f32.vlgmr.msra.gmra.mxu0 %v339_v42  ;;  %v332_v59 = vcombine.high %v330_v48, %v330_v48 }
 0x110   :  { %2015 = vmatpush3.xpose.msra.mxu0 %v301_v46  ;;  %2016 = vmatprep.mubr.msk.f32.mxu0 %vm2271_vm0, %v2270_v0  ;;  %v363_v60 = vcombine.high %v353_v50, %v353_v50  ;;  %v362_v61 = vcombine.high %v346_v54, %v346_v54  ;;  %v305_v62 = vmax.f32 %v2005_v47, 0.0 }
 0x111   :  { %v281_v49 = vpop.f32.mrf.mxu1  ;;  %2019 = vmatprep.subr.mxu0 %v2270_v0  ;;  %v360_v63 = vrot.slane %v332_v59, %v322_v34 }
 0x112   :  { %v304_v52 = vmax.f32 %v281_v49, 0.0 }
 0x113   :  { %v2008_v53 = vpop.f32.mrf.mxu1  ;;  %2017 = vmatmul.mubr.f32.vlgmr.msra.gmra.mxu0 %v353_v50  ;;  %v364_v2 = vcombine.high %v360_v63, %v360_v63 }
 0x114   :  { %2020 = vmatpush3.xpose.msra.mxu0 %v302_v51  ;;  %2030 = vmatpush3.xpose.msra.mxu1 %v304_v52  ;;  %v307_v1 = vmax.f32 %v2008_v53, 0.0 }
 0x115   :  { %v291_v55 = vpop.f32.mrf.mxu1  ;;  %2021 = vmatprep.mubr.msk.f32.mxu0 %vm2271_vm0, %v2270_v0  ;;  %2024 = vmatprep.subr.mxu0 %v2270_v0 }
 0x116   :  { %v306_v58 = vmax.f32 %v291_v55, 0.0  ;;  %2039 = vmatprep.subr.mxu1 %v2270_v0 }
 0x117   :  { %2022 = vmatmul.mubr.f32.vlgmr.msra.gmra.mxu0 %v361_v56  ;;  %2032 = vmatmul.mubr.f32.vlgmr.msra.gmra.mxu1 %v346_v54 }
 0x118   :  { %2025 = vmatpush3.xpose.msra.mxu0 %v303_v57  ;;  %2040 = vmatpush3.xpose.msra.mxu1 %v306_v58 }
 0x119   :  { %2026 = vmatprep.mubr.msk.f32.mxu0 %vm2271_vm0, %v2270_v0  ;;  %2041 = vmatprep.mubr.msk.f32.mxu1 %vm2271_vm0, %v2270_v0 }
 0x11a   :  { %2034 = vmatprep.subr.mxu0 %v2270_v0  ;;  %2049 = vmatprep.subr.mxu1 %v2270_v0 }
 0x11b   :  { %2027 = vmatmul.mubr.f32.vlgmr.msra.gmra.mxu0 %v363_v60  ;;  %2042 = vmatmul.mubr.f32.vlgmr.msra.gmra.mxu1 %v362_v61 }
 0x11c   :  { %2035 = vmatpush3.xpose.msra.mxu0 %v305_v62  ;;  %2036 = vmatprep.mubr.msk.f32.mxu0 %vm2271_vm0, %v2270_v0 }
 0x11d   :  { %2044 = vmatprep.subr.mxu0 %v2270_v0  ;;  %2050 = vmatpush3.msra.mxu1 %v2352_v18 }
 0x11e   :  { %2051 = vmatprep.mubr.msk.f32.mxu1 %vm2271_vm0, %v2270_v0  ;;  %2059 = vmatprep.subr.mxu1 %v2270_v0 }
 0x11f   :  { %2037 = vmatmul.mubr.f32.vlgmr.msra.gmra.mxu0 %v360_v63 }
 0x120   :  { %2045 = vmatpush3.xpose.msra.mxu0 %v307_v1  ;;  %2046 = vmatprep.mubr.msk.f32.mxu0 %vm2271_vm0, %v2270_v0 }
 0x121   :  { %2054 = vmatprep.subr.mxu0 %v2270_v0 }
 0x123   :  { %2047 = vmatmul.mubr.f32.vlgmr.msra.gmra.mxu0 %v364_v2 }
 0x124   :  { %2055 = vmatpush3.msra.mxu0 %v2357_v19  ;;  %2056 = vmatprep.mubr.msk.f32.mxu0 %vm2271_vm0, %v2270_v0 }
 0x125   :  { %2064 = vmatprep.subr.mxu0 %v2270_v0 }
 0x1cf   :  { %v439_v3 = vpop.f32.mrf.mxu0 }
 0x1d0   :  { %v934_v4 = vsel %vm933_vm1, %v439_v3, -inf }
 0x1d1   :  { %935 = vmax.xlane.f32.xlu0 %v934_v4  ;;  %v2013_v5 = vpop.f32.mrf.mxu0 }
 0x1d3   :  { %v509_v6 = vpop.f32.mrf.mxu0 }
 0x1d4   :  { %v937_v7 = vsel %vm933_vm1, %v509_v6, -inf }
 0x1d5   :  { %938 = vmax.xlane.f32.xlu0 %v937_v7  ;;  %v2018_v8 = vpop.f32.mrf.mxu0 }
 0x1d7   :  { %v579_v9 = vpop.f32.mrf.mxu0  ;;  %v719_v10 = vpop.f32.mrf.mxu1 }
 0x1d8   :  { %v946_v11 = vsel %vm933_vm1, %v719_v10, -inf  ;;  %v940_v12 = vsel %vm933_vm1, %v579_v9, -inf }
 0x1d9   :  { %v2033_v13 = vpop.f32.mrf.mxu1  ;;  %947 = vmax.xlane.f32.xlu0 %v946_v11  ;;  %941 = vmax.xlane.f32.xlu1 %v940_v12  ;;  %v2023_v14 = vpop.f32.mrf.mxu0 }
 0x1db   :  { %v649_v15 = vpop.f32.mrf.mxu0  ;;  %v859_v16 = vpop.f32.mrf.mxu1 }
 0x1dc   :  { %v952_v18 = vsel %vm933_vm1, %v859_v16, -inf  ;;  %v943_v19 = vsel %vm933_vm1, %v649_v15, -inf }
 0x1dd   :  { %v2043_v26 = vpop.f32.mrf.mxu1  ;;  %953 = vmax.xlane.f32.xlu0 %v952_v18  ;;  %944 = vmax.xlane.f32.xlu1 %v943_v19  ;;  %v2028_v27 = vpop.f32.mrf.mxu0 }
 0x1df   :  { %v789_v28 = vpop.f32.mrf.mxu0 }
 0x1e0   :  { %v949_v29 = vsel %vm933_vm1, %v789_v28, -inf }
 0x1e1   :  { %950 = vmax.xlane.f32.xlu1 %v949_v29  ;;  %v2038_v30 = vpop.f32.mrf.mxu0 }
 0x1e3   :  { %v929_v31 = vpop.f32.mrf.mxu0 }
 0x1e4   :  { %v955_v32 = vsel %vm933_vm1, %v929_v31, -inf }
 0x1e5   :  { %956 = vmax.xlane.f32.xlu1 %v955_v32  ;;  %v2048_v33 = vpop.f32.mrf.mxu0 }
 0x25a   :  { %v936_v34 = vpop.xlane.xlu0 %935 }
 0x25b   :  { %v958_v35 = vsub.f32 %v439_v3, %v936_v34 }
 0x25d   :  { %v966_v36 = vmul.f32 1.442695, %v958_v35 }
 0x25e   :  { %v939_v37 = vpop.xlane.xlu0 %938 }
 0x25f   :  { %2167 = vpow2.f32 %v966_v36  ;;  %v959_v38 = vsub.f32 %v509_v6, %v939_v37 }
 0x261   :  { %v968_v39 = vmul.f32 1.442695, %v959_v38 }
 0x262   :  { %v948_v40 = vpop.xlane.xlu0 %947  ;;  %v942_v41 = vpop.xlane.xlu1 %941 }
 0x263   :  { %2169 = vpow2.f32 %v968_v39  ;;  %v962_v42 = vsub.f32 %v719_v10, %v948_v40  ;;  %v960_v43 = vsub.f32 %v579_v9, %v942_v41  ;;  %v123_v40 = vld [vmem:[#allocation6 + $0x78] sm:$0xff] }
 0x265   :  { %v970_v44 = vmul.f32 1.442695, %v960_v43  ;;  %v974_v45 = vmul.f32 1.442695, %v962_v42 }
 0x266   :  { %v954_v46 = vpop.xlane.xlu0 %953  ;;  %v945_v47 = vpop.xlane.xlu1 %944 }
 0x267   :  { %v964_v48 = vsub.f32 %v859_v16, %v954_v46  ;;  %v961_v49 = vsub.f32 %v649_v15, %v945_v47  ;;  %2171 = vpow2.f32 %v970_v44  ;;  %v122_v44 = vld [vmem:[#allocation6 + $0x70] sm:$0xff] }
 0x268   :  { %2173 = vpow2.f32 %v974_v45 }
 0x269   :  { %v972_v50 = vmul.f32 1.442695, %v961_v49  ;;  %v978_v51 = vmul.f32 1.442695, %v964_v48  ;;  %v107_v49 = vld [vmem:[#allocation4 + $0x78] sm:$0xff] }
 0x26a   :  { %v951_v52 = vpop.xlane.xlu1 %950 }
 0x26b   :  { %v963_v53 = vsub.f32 %v789_v28, %v951_v52  ;;  %2175 = vpow2.f32 %v972_v50  ;;  %v121_v50 = vld [vmem:[#allocation6 + $0x68] sm:$0xff]  ;;  %v106_v52 = vld [vmem:[#allocation4 + $0x70] sm:$0xff] }
 0x26c   :  { %v2168_v54 = vpop.eup %2167  ;;  %2177 = vpow2.f32 %v978_v51 }
 0x26d   :  { %v976_v55 = vmul.f32 1.442695, %v963_v53  ;;  %v982_v56 = vsel %vm933_vm1, %v2168_v54, 0.0  ;;  %v120_v53 = vld [vmem:[#allocation6 + $0x60] sm:$0xff] }
 0x26e   :  { %983 = vadd.xlane.f32.xlu0 %v982_v56  ;;  %v957_v57 = vpop.xlane.xlu1 %956  ;;  %v105_v56 = vld [vmem:[#allocation4 + $0x68] sm:$0xff] }
 0x26f   :  { %2179 = vpow2.f32 %v976_v55  ;;  %v965_v58 = vsub.f32 %v929_v31, %v957_v57  ;;  %v104_v57 = vld [vmem:[#allocation4 + $0x60] sm:$0xff] }
 0x270   :  { %v2170_v59 = vpop.eup %2169 }
 0x271   :  { %v980_v60 = vmul.f32 1.442695, %v965_v58  ;;  %v985_v61 = vsel %vm933_vm1, %v2170_v59, 0.0  ;;  %v119_v58 = vld [vmem:[#allocation6 + $0x58] sm:$0xff] }
 0x272   :  { %986 = vadd.xlane.f32.xlu1 %v985_v61  ;;  %v102_v61 = vld [vmem:[#allocation4 + $0x50] sm:$0xff] }
 0x273   :  { %2181 = vpow2.f32 %v980_v60  ;;  %v118_v60 = vld [vmem:[#allocation6 + $0x50] sm:$0xff] }
 0x274   :  { %v2172_v62 = vpop.eup %2171 }
 0x275   :  { %v988_v63 = vsel %vm933_vm1, %v2172_v62, 0.0  ;;  %v2174_v1 = vpop.eup %2173 }
 0x276   :  { %989 = vadd.xlane.f32.xlu0 %v988_v63  ;;  %v994_v3 = vsel %vm933_vm1, %v2174_v1, 0.0  ;;  %v101_v63 = vld [vmem:[#allocation4 + $0x48] sm:$0xff] }
 0x278   :  { %v2176_v2 = vpop.eup %2175 }
 0x279   :  { %v991_v4 = vsel %vm933_vm1, %v2176_v2, 0.0  ;;  %v2448_v5 = vpop.eup %2177 }
 0x27a   :  { %995 = vadd.xlane.f32.xlu0 %v994_v3  ;;  %992 = vadd.xlane.f32.xlu1 %v991_v4  ;;  %v1000_v8 = vsel %vm933_vm1, %v2448_v5, 0.0  ;;  %v115_v3 = vld [vmem:[#allocation6 + $0x38] sm:$0xff] }
 0x27b   :  { %v99_v4 = vld [vmem:[#allocation4 + $0x38] sm:$0xff] }
 0x27c   :  { %v2450_v6 = vpop.eup %2179 }
 0x27d   :  { %v997_v7 = vsel %vm933_vm1, %v2450_v6, 0.0 }
 0x27e   :  { %1001 = vadd.xlane.f32.xlu0 %v1000_v8  ;;  %998 = vadd.xlane.f32.xlu1 %v997_v7  ;;  %v113_v7 = vld [vmem:[#allocation6 + $0x28] sm:$0xff] }
 0x27f   :  { %v97_v8 = vld [vmem:[#allocation4 + $0x28] sm:$0xff] }
 0x280   :  { %v2456_v9 = vpop.eup %2181 }
 0x281   :  { %v1003_v10 = vsel %vm933_vm1, %v2456_v9, 0.0 }
 0x282   :  { %1004 = vadd.xlane.f32.xlu1 %v1003_v10  ;;  %v96_v10 = vld [vmem:[#allocation4 + $0x20] sm:$0xff] }
 0x2f7   :  { %v984_v11 = vpop.xlane.xlu0 %983 }
 0x2f8   :  { %2183 = vrcp.f32 %v984_v11  ;;  %v111_v11 = vld [vmem:[#allocation6 + $0x18] sm:$0xff] }
 0x2fb   :  { %v987_v12 = vpop.xlane.xlu1 %986 }
 0x2fc   :  { %2185 = vrcp.f32 %v987_v12  ;;  %v95_v12 = vld [vmem:[#allocation4 + $0x18] sm:$0xff] }
 0x2ff   :  { %v990_v13 = vpop.xlane.xlu0 %989 }
 0x300   :  { %2187 = vrcp.f32 %v990_v13  ;;  %v110_v13 = vld [vmem:[#allocation6 + $0x10] sm:$0xff] }
 0x303   :  { %v996_v14 = vpop.xlane.xlu0 %995  ;;  %v993_v15 = vpop.xlane.xlu1 %992 }
 0x304   :  { %2189 = vrcp.f32 %v996_v14  ;;  %v94_v14 = vld [vmem:[#allocation4 + $0x10] sm:$0xff] }
 0x305   :  { %v2184_v16 = vpop.eup %2183  ;;  %2191 = vrcp.f32 %v993_v15  ;;  %v109_v15 = vld [vmem:[#allocation6 + $0x8] sm:$0xff] }
 0x306   :  { %v1022_v18 = vmul.f32 %v2184_v16, %v2168_v54  ;;  %v93_v16 = vld [vmem:[#allocation4 + $0x8] sm:$0xff] }
 0x307   :  { %v1002_v19 = vpop.xlane.xlu0 %1001  ;;  %v999_v26 = vpop.xlane.xlu1 %998 }
 0x308   :  { %2052 = vmatmul.mubr.msk.f32.vlgmr.msra.gmra.mxu1 %vm1061_vm2, %v1022_v18  ;;  %2193 = vrcp.f32 %v1002_v19  ;;  %v92_v19 = vld [vmem:[#allocation4] sm:$0xff] }
 0x309   :  { %v2186_v27 = vpop.eup %2185  ;;  %2060 = vmatpush3.msra.mxu1 %v2363_v20  ;;  %2061 = vmatprep.mubr.msk.f32.mxu1 %vm2271_vm0, %v2270_v0  ;;  %2195 = vrcp.f32 %v999_v26 }
 0x30a   :  { %v1023_v28 = vmul.f32 %v2186_v27, %v2170_v59  ;;  %2069 = vmatprep.subr.mxu1 %v2270_v0  ;;  %v103_v59 = vld [vmem:[#allocation4 + $0x58] sm:$0xff] }
 0x30b   :  { %v1005_v29 = vpop.xlane.xlu1 %1004 }
 0x30c   :  { %2057 = vmatmul.mubr.msk.f32.vlgmr.msra.gmra.mxu0 %vm1061_vm2, %v1023_v28  ;;  %2197 = vrcp.f32 %v1005_v29  ;;  %v1039_v32 = vrot.slane %v1023_v28, 7 }
 0x30d   :  { %2065 = vmatpush3.msra.mxu0 %v2374_v21  ;;  %2066 = vmatprep.mubr.msk.f32.mxu0 %vm2271_vm0, %v2270_v0  ;;  %v2188_v30 = vpop.eup %2187 }
 0x30e   :  { %2074 = vmatprep.subr.mxu0 %v2270_v0  ;;  %v1024_v20 = vmul.f32 %v2188_v30, %v2172_v62  ;;  %v117_v62 = vld [vmem:[#allocation6 + $0x48] sm:$0xff] }
 0x310   :  { %2062 = vmatmul.mubr.msk.f32.vlgmr.msra.gmra.mxu1 %vm1061_vm2, %v1024_v20  ;;  %v1042_v21 = vrot.slane %v1024_v20, 6 }
 0x311   :  { %v2190_v31 = vpop.eup %2189  ;;  %2070 = vmatpush3.msra.mxu1 %v2380_v22  ;;  %2071 = vmatprep.mubr.msk.f32.mxu1 %vm2271_vm0, %v2270_v0  ;;  %v1041_v22 = vsel %vm1040_vm3, %v1039_v32, %v1022_v18  ;;  %v108_v18 = vld [vmem:[#allocation6] sm:$0xff] }
 0x312   :  { %v2192_v33 = vpop.eup %2191  ;;  %v1026_v34 = vmul.f32 %v2190_v31, %v2174_v1  ;;  %2079 = vmatprep.subr.mxu1 %v2270_v0  ;;  %v1044_v41 = vsel %vm1043_vm4, %v1042_v21, %v1041_v22  ;;  %v116_v1 = vld [vmem:[#allocation6 + $0x40] sm:$0xff] }
 0x313   :  { %v1025_v35 = vmul.f32 %v2192_v33, %v2176_v2  ;;  %v100_v2 = vld [vmem:[#allocation4 + $0x40] sm:$0xff] }
 0x314   :  { %2072 = vmatmul.mubr.msk.f32.vlgmr.msra.gmra.mxu1 %vm1061_vm2, %v1026_v34  ;;  %v1048_v42 = vrot.slane %v1026_v34, 4 }
 0x315   :  { %v2194_v36 = vpop.eup %2193  ;;  %2067 = vmatmul.mubr.msk.f32.vlgmr.msra.gmra.mxu0 %vm1061_vm2, %v1025_v35  ;;  %2080 = vmatpush3.msra.mxu1 %v2392_v24  ;;  %v1045_v37 = vrot.slane %v1025_v35, 5 }
 0x316   :  { %v2196_v38 = vpop.eup %2195  ;;  %2075 = vmatpush3.msra.mxu0 %v2387_v23  ;;  %2076 = vmatprep.mubr.msk.f32.mxu0 %vm2271_vm0, %v2270_v0  ;;  %v1028_v39 = vmul.f32 %v2194_v36, %v2448_v5  ;;  %v114_v5 = vld [vmem:[#allocation6 + $0x30] sm:$0xff] }
 0x317   :  { %2081 = vmatprep.mubr.msk.f32.mxu1 %vm2271_vm0, %v2270_v0  ;;  %v1027_v24 = vmul.f32 %v2196_v38, %v2450_v6  ;;  %2084 = vmatprep.subr.mxu0 %v2270_v0  ;;  %v1047_v43 = vsel %vm1046_vm5, %v1045_v37, %v1044_v41  ;;  %v98_v6 = vld [vmem:[#allocation4 + $0x30] sm:$0xff] }
 0x318   :  { %2082 = vmatmul.mubr.msk.f32.vlgmr.msra.gmra.mxu1 %vm1061_vm2, %v1028_v39  ;;  %2089 = vmatprep.subr.mxu1 %v2270_v0  ;;  %v1054_v46 = vrot.slane %v1028_v39, 2  ;;  %v1050_v48 = vsel %vm1049_vm6, %v1048_v42, %v1047_v43 }
 0x319   :  { %v2198_v23 = vpop.eup %2197  ;;  %2077 = vmatmul.mubr.msk.f32.vlgmr.msra.gmra.mxu0 %vm1061_vm2, %v1027_v24  ;;  %2090 = vmatpush3.msra.mxu1 %v123_v40  ;;  %v1051_v45 = vrot.slane %v1027_v24, 3 }
 0x31a   :  { %2085 = vmatpush3.msra.mxu0 %v2399_v25  ;;  %2086 = vmatprep.mubr.msk.f32.mxu0 %vm2271_vm0, %v2270_v0  ;;  %v1029_v47 = vmul.f32 %v2198_v23, %v2456_v9  ;;  %v112_v9 = vld [vmem:[#allocation6 + $0x20] sm:$0xff] }
 0x31b   :  { %2124 = vmatprep.subr.mxu0 %v2270_v0  ;;  %2091 = vmatprep.subr.mxu1 %v2270_v0  ;;  %v1053_v51 = vsel %vm1052_vm7, %v1051_v45, %v1050_v48 }
 0x31c   :  { %2092 = vmatpush3.msra.mxu1 %v122_v44  ;;  %2121 = vmatprep.mubr.msk.f32.mxu1 %vm2271_vm0, %v2270_v0  ;;  %v1057_v25 = vrot.slane %v1029_v47, 1  ;;  %v1056_v54 = vsel %vm1055_vm8, %v1054_v46, %v1053_v51 }
 0x31d   :  { %2087 = vmatmul.mubr.msk.f32.vlgmr.msra.gmra.mxu0 %vm1061_vm2, %v1029_v47  ;;  %2093 = vmatprep.subr.mxu1 %v2270_v0 }
 0x31e   :  { %2125 = vmatpush3.msra.mxu0 %v107_v49  ;;  %2094 = vmatpush3.msra.mxu1 %v121_v50  ;;  %v1059_v55 = vsel %vm1058_vm9, %v1057_v25, %v1056_v54 }
 0x31f   :  { %2126 = vmatprep.subr.mxu0 %v2270_v0  ;;  %2095 = vmatprep.subr.mxu1 %v2270_v0  ;;  %1062 = vst.msk [vmem:[%s2558_s7] sm:$0xff] %vm1061_vm2, %v1059_v55 }
 0x320   :  { %2127 = vmatpush3.msra.mxu0 %v106_v52  ;;  %2096 = vmatpush3.msra.mxu1 %v120_v53 }
 0x321   :  { %2128 = vmatprep.subr.mxu0 %v2270_v0  ;;  %2097 = vmatprep.subr.mxu1 %v2270_v0 }
 0x322   :  { %2129 = vmatpush3.msra.mxu0 %v105_v56  ;;  %2156 = vmatprep.mubr.msk.f32.mxu0 %vm2271_vm0, %v2270_v0 }
 0x323   :  { %2130 = vmatprep.subr.mxu0 %v2270_v0  ;;  %2098 = vmatpush3.msra.mxu1 %v119_v58 }
 0x324   :  { %2131 = vmatpush3.msra.mxu0 %v104_v57  ;;  %2099 = vmatprep.subr.mxu1 %v2270_v0 }
 0x325   :  { %2132 = vmatprep.subr.mxu0 %v2270_v0  ;;  %2100 = vmatpush3.msra.mxu1 %v118_v60 }
 0x326   :  { %2133 = vmatpush3.msra.mxu0 %v103_v59  ;;  %2101 = vmatprep.subr.mxu1 %v2270_v0 }
 0x327   :  { %2134 = vmatprep.subr.mxu0 %v2270_v0  ;;  %2102 = vmatpush3.msra.mxu1 %v117_v62 }
 0x328   :  { %2135 = vmatpush3.msra.mxu0 %v102_v61  ;;  %2103 = vmatprep.subr.mxu1 %v2270_v0 }
 0x329   :  { %2136 = vmatprep.subr.mxu0 %v2270_v0  ;;  %2104 = vmatpush3.msra.mxu1 %v116_v1 }
 0x32a   :  { %2137 = vmatpush3.msra.mxu0 %v101_v63  ;;  %2105 = vmatprep.subr.mxu1 %v2270_v0 }
 0x32b   :  { %2138 = vmatprep.subr.mxu0 %v2270_v0  ;;  %2106 = vmatpush3.msra.mxu1 %v115_v3 }
 0x32c   :  { %2139 = vmatpush3.msra.mxu0 %v100_v2  ;;  %2107 = vmatprep.subr.mxu1 %v2270_v0 }
 0x32d   :  { %2140 = vmatprep.subr.mxu0 %v2270_v0  ;;  %2108 = vmatpush3.msra.mxu1 %v114_v5 }
 0x32e   :  { %2141 = vmatpush3.msra.mxu0 %v99_v4  ;;  %2109 = vmatprep.subr.mxu1 %v2270_v0 }
 0x32f   :  { %2142 = vmatprep.subr.mxu0 %v2270_v0  ;;  %2110 = vmatpush3.msra.mxu1 %v113_v7 }
 0x330   :  { %2143 = vmatpush3.msra.mxu0 %v98_v6  ;;  %2111 = vmatprep.subr.mxu1 %v2270_v0 }
 0x331   :  { %2144 = vmatprep.subr.mxu0 %v2270_v0  ;;  %2112 = vmatpush3.msra.mxu1 %v112_v9 }
 0x332   :  { %2145 = vmatpush3.msra.mxu0 %v97_v8  ;;  %2113 = vmatprep.subr.mxu1 %v2270_v0 }
 0x333   :  { %2146 = vmatprep.subr.mxu0 %v2270_v0  ;;  %2114 = vmatpush3.msra.mxu1 %v111_v11 }
 0x334   :  { %2147 = vmatpush3.msra.mxu0 %v96_v10  ;;  %2115 = vmatprep.subr.mxu1 %v2270_v0 }
 0x335   :  { %2148 = vmatprep.subr.mxu0 %v2270_v0  ;;  %2116 = vmatpush3.msra.mxu1 %v110_v13 }
 0x336   :  { %2149 = vmatpush3.msra.mxu0 %v95_v12  ;;  %2117 = vmatprep.subr.mxu1 %v2270_v0 }
 0x337   :  { %2150 = vmatprep.subr.mxu0 %v2270_v0  ;;  %2118 = vmatpush3.msra.mxu1 %v109_v15 }
 0x338   :  { %2151 = vmatpush3.msra.mxu0 %v94_v14  ;;  %2119 = vmatprep.subr.mxu1 %v2270_v0 }
 0x339   :  { %2152 = vmatprep.subr.mxu0 %v2270_v0  ;;  %2120 = vmatpush3.msra.mxu1 %v108_v18 }
 0x33a   :  { %2153 = vmatpush3.msra.mxu0 %v93_v16  ;;  %2122 = vmatmul.mubr.f32.vlgmr.msra.gmra.mxu1 %v2346_v17 }
 0x33b   :  { %2154 = vmatprep.subr.mxu0 %v2270_v0 }
 0x33c   :  { %2155 = vmatpush3.msra.mxu0 %v92_v19 }
 0x3c8   :  { %v1131_v26 = vpop.f32.mrf.mxu1 }
 0x3ca   :  { %v2053_v27 = vpop.f32.mrf.mxu1 }
 0x3cc   :  { %v1203_v28 = vpop.f32.mrf.mxu0 }
 0x3cd   :  { %v1717_v20 = vrot.slane %v1203_v28, 7 }
 0x3ce   :  { %v2058_v29 = vpop.f32.mrf.mxu0 }
 0x3cf   :  { %v1718_v21 = vsel %vm1040_vm3, %v1717_v20, %v1131_v26 }
 0x3d0   :  { %v1275_v30 = vpop.f32.mrf.mxu1 }
 0x3d1   :  { %v1719_v32 = vrot.slane %v1275_v30, 6 }
 0x3d2   :  { %v2063_v31 = vpop.f32.mrf.mxu1 }
 0x3d3   :  { %v1720_v0 = vsel %vm1043_vm4, %v1719_v32, %v1718_v21 }
 0x3d4   :  { %v1419_v33 = vpop.f32.mrf.mxu1 }
 0x3d5   :  { %v1347_v34 = vpop.f32.mrf.mxu0  ;;  %v1723_v22 = vrot.slane %v1419_v33, 4 }
 0x3d6   :  { %v1721_v35 = vrot.slane %v1347_v34, 5  ;;  %v2073_v36 = vpop.f32.mrf.mxu1 }
 0x3d7   :  { %v2068_v37 = vpop.f32.mrf.mxu0 }
 0x3d8   :  { %v1722_v17 = vsel %vm1046_vm5, %v1721_v35, %v1720_v0  ;;  %v1563_v38 = vpop.f32.mrf.mxu1 }
 0x3d9   :  { %v1491_v39 = vpop.f32.mrf.mxu0  ;;  %v1724_v42 = vsel %vm1049_vm6, %v1723_v22, %v1722_v17  ;;  %v1727_v24 = vrot.slane %v1563_v38, 2 }
 0x3da   :  { %v1725_v40 = vrot.slane %v1491_v39, 3  ;;  %v2083_v41 = vpop.f32.mrf.mxu1 }
 0x3db   :  { %v2078_v43 = vpop.f32.mrf.mxu0 }
 0x3dc   :  { %v1726_v23 = vsel %vm1052_vm7, %v1725_v40, %v1724_v42 }
 0x3dd   :  { %v1635_v44 = vpop.f32.mrf.mxu0  ;;  %v1728_v46 = vsel %vm1055_vm8, %v1727_v24, %v1726_v23 }
 0x3de   :  { %v1729_v45 = vrot.slane %v1635_v44, 1 }
 0x3df   :  { %v2088_v47 = vpop.f32.mrf.mxu0 }
 0x3e0   :  { %v1730_v48 = vsel %vm1058_vm9, %v1729_v45, %v1728_v46 }
 0x3e1   :  { %2157 = vmatmul.mubr.f32.vlgmr.msra.gmra.mxu0 %v1730_v48 }
 0x3fa   :  { %v1705_v49 = vpop.f32.mrf.mxu1 }
 0x3fc   :  { %v2123_v50 = vpop.f32.mrf.mxu1 }
 0x4a1   :  { %v1798_v51 = vpop.f32.mrf.mxu0 }
 0x4a2   :  { %v1799_v25 = vadd.f32 %v1798_v51, %v1705_v49 }
 0x4a3   :  { %v2158_v52 = vpop.f32.mrf.mxu0 }
 0x4a4   :  { %2199 = vtanh.f32 %v1799_v25 }
 0x4b1   :  { %v2200_v53 = vpop.eup %2199 }
 0x4b2   :  { %1803 = vst [vmem:[%s2557_s6] sm:$0xff] %v2200_v53 }
 0x4b3   :  { %1812 = vsyncpa [#allocation3], 1 }
 0x4b4   :  { %1813 = vsyncpa [#allocation5], 1 }

// kernel: deep_attention.1
= control target key start
LH: loop header
LB: loop body
LE: loop exit
PB: predicated region body
PF: predicated region fallthrough
CT: control target
= control target key end

     0   :  { %13 = vsyncpa [#allocation3], 0  ;;  %s2551_s0 = inlined_call_operand.vmem [shape: f32[8,128], index: 0, kind: input, shape index: {}]   ;;  %s2552_s1 = inlined_call_operand.vmem [shape: f32[8,8,128], index: 1, kind: input, shape index: {}]   ;;  %s2553_s2 = inlined_call_operand.hbm [shape: f32[128,128], index: 2, kind: input, shape index: {}]   ;;  %s2554_s3 = inlined_call_operand.vmem [shape: f32[1,128], index: 3, kind: input, shape index: {}]   ;;  %s2555_s4 = inlined_call_operand.hbm [shape: f32[128,128], index: 4, kind: input, shape index: {}]   ;;  %s2556_s5 = inlined_call_operand.hbm [shape: f32[128,128], index: 5, kind: input, shape index: {}]   ;;  %s2557_s6 = inlined_call_operand.vmem [shape: f32[8,128], index: 6, kind: output, shape index: {0}]   ;;  %s2558_s7 = inlined_call_operand.vmem [shape: f32[8,128], index: 7, kind: output, shape index: {1}]  }
   0x1   :  { %14 = vsyncpa [#allocation5], 0  ;;  %s2265_s24 = smov [#allocation4]   ;;  %s2266_s26 = smov [#allocation2]  }
   0x2   :  { %s38_s25 = sshll.u32 %s2265_s24, 4  ;;  %s24_s27 = sshll.u32 %s2266_s26, 4  ;;  %s39_s25 = int_to_ptr.vmem [resolvable:$true] %s38_s25  ;;  %s25_s27 = int_to_ptr.vmem [resolvable:$true] %s24_s27 }
   0x3   :  { %s2209_s28 = scalar_lea.vmem %s39_s25, 2048  ;;  %p2214_p1 = scmp.lt.s32.totalorder %s39_s25, %s39_s25 }
   0x4   :  { %p2210_p0 = scmp.ne.s32.totalorder %s39_s25, %s2209_s28  ;;  %p2215_p2 = scmp.lt.s32.totalorder %s2209_s28, %s2209_s28 }
   0x6   :  { %p2216_p3 = por %p2215_p2, %p2214_p1 }
   0x8   :  { %p2217_p4 = pnand %p2216_p3, %p2210_p0 }
   0xa   :  { %2220 = shalt.err (!%p2217_p4)
}
   0xb   :  { %s2267_s29 = smov 128   ;;  %s2268_s30 = smov 8  }
   0xc   :  { %44 = dma.hbm_to_vmem [thread:$0]  %s2555_s4, 2048, %s39_s25, [#allocation5], %s2267_s29, %s2267_s29, %s2268_s30  }
   0xd   :  { %s2229_s10 = scalar_lea.vmem %s25_s27, 2048  ;;  %p2234_p6 = scmp.lt.s32.totalorder %s25_s27, %s25_s27 }
   0xe   :  { %p2230_p5 = scmp.ne.s32.totalorder %s25_s27, %s2229_s10  ;;  %p2235_p7 = scmp.lt.s32.totalorder %s2229_s10, %s2229_s10 }
  0x10   :  { %p2236_p8 = por %p2235_p7, %p2234_p6 }
  0x12   :  { %p2237_p9 = pnand %p2236_p8, %p2230_p5 }
  0x14   :  { %2240 = shalt.err (!%p2237_p9)
}
  0x15   :  { %30 = dma.hbm_to_vmem [thread:$0]  %s2553_s2, 2048, %s25_s27, [#allocation3], %s2267_s29, %s2267_s29, %s2268_s30  }
  0x16   :  { %s2269_s13 = smov [#allocation6]  }
  0x17   :  { %s50_s14 = sshll.u32 %s2269_s13, 4  ;;  %s51_s14 = int_to_ptr.vmem [resolvable:$true] %s50_s14 }
  0x18   :  { %s2249_s15 = scalar_lea.vmem %s51_s14, 2048  ;;  %p2254_p11 = scmp.lt.s32.totalorder %s51_s14, %s51_s14 }
  0x19   :  { %p2250_p10 = scmp.ne.s32.totalorder %s51_s14, %s2249_s15  ;;  %p2255_p12 = scmp.lt.s32.totalorder %s2249_s15, %s2249_s15 }
  0x1b   :  { %p2256_p13 = por %p2255_p12, %p2254_p11 }
  0x1d   :  { %p2257_p0 = pnand %p2256_p13, %p2250_p10 }
  0x1f   :  { %2260 = shalt.err (!%p2257_p0)
}
  0x20   :  { %56 = dma.hbm_to_vmem [thread:$0]  %s2556_s5, 2048, %s51_s14, [#allocation5], %s2267_s29, %s2267_s29, %s2268_s30  }
  0x21   :  { %2261 = dma.done.wait [#allocation3], 2048  }
  0x22   :  { %2262 = vsyncadd [#allocation3], 4294965248 }
  0x23   :  { %2263 = dma.done.wait [#allocation5], 4096  }
  0x24   :  { %2264 = vsyncadd [#allocation5], 4294963200  ;;  %v2270_v0 = vmov 0.0   ;;  %vm2271_vm0 = vmmov 0   ;;  %v90_v1 = vld [vmem:[#allocation2 + $0x78] sm:$0xff]  ;;  %v89_v2 = vld [vmem:[#allocation2 + $0x70] sm:$0xff]  ;;  %v320_v28 = vlaneseq }
  0x25   :  { %1930 = vmatprep.subr.mxu0 %v2270_v0  ;;  %1030 = vst [vmem:[%s2558_s7] sm:$0xff] %v2270_v0  ;;  %1962 = vmatprep.mubr.msk.f32.mxu0 %vm2271_vm0, %v2270_v0  ;;  %v88_v3 = vld [vmem:[#allocation2 + $0x68] sm:$0xff]  ;;  %v87_v4 = vld [vmem:[#allocation2 + $0x60] sm:$0xff]  ;;  %v86_v5 = vld [vmem:[#allocation2 + $0x58] sm:$0xff]  ;;  %v2272_v26 = vmov 1966171168   ;;  %vm933_vm1 = vcmask 57344  }
  0x26   :  { %1931 = vmatpush3.msra.mxu0 %v90_v1  ;;  %1965 = vmatprep.subr.mxu1 %v90_v1  ;;  %v85_v6 = vld [vmem:[#allocation2 + $0x50] sm:$0xff]  ;;  %v84_v7 = vld [vmem:[#allocation2 + $0x48] sm:$0xff]  ;;  %v83_v8 = vld [vmem:[#allocation2 + $0x40] sm:$0xff]  ;;  %v318_v27 = vunpack.c.l.s4 %v2272_v26  ;;  %v321_v30 = vshrl.u32 %v320_v28, 7  ;;  %vm1061_vm2 = vcmask 64512   ;;  %vm1040_vm3 = vcmask 1041409  }
  0x27   :  { %1932 = vmatprep.subr.mxu0 %v2270_v0  ;;  %1966 = vmatpush3.msra.mxu1 %v90_v1  ;;  %v82_v9 = vld [vmem:[#allocation2 + $0x38] sm:$0xff]  ;;  %v81_v10 = vld [vmem:[#allocation2 + $0x30] sm:$0xff]  ;;  %v80_v11 = vld [vmem:[#allocation2 + $0x28] sm:$0xff]  ;;  %vm1043_vm4 = vcmask 1042434   ;;  %vm1046_vm5 = vcmask 1043459   ;;  %vm1049_vm6 = vcmask 1044484  }
  0x28   :  { %1933 = vmatpush3.msra.mxu0 %v89_v2  ;;  %1967 = vmatprep.subr.mxu1 %v89_v2  ;;  %v79_v12 = vld [vmem:[#allocation2 + $0x20] sm:$0xff]  ;;  %v78_v13 = vld [vmem:[#allocation2 + $0x18] sm:$0xff]  ;;  %v77_v14 = vld [vmem:[#allocation2 + $0x10] sm:$0xff]  ;;  %v319_v29 = vunpack.c.0.s8 %v318_v27  ;;  %vm1052_vm7 = vcmask 1045509   ;;  %vm1055_vm8 = vcmask 1046534   ;;  %vm1058_vm9 = vcmask 1047559  }
  0x29   :  { %1934 = vmatprep.subr.mxu0 %v2270_v0  ;;  %1968 = vmatpush3.msra.mxu1 %v89_v2  ;;  %v76_v15 = vld [vmem:[#allocation2 + $0x8] sm:$0xff]  ;;  %v75_v16 = vld [vmem:[#allocation2] sm:$0xff]  ;;  %v2363_v20 = vld [vmem:[%s2552_s1 + $0x10] sm:$0xff] }
  0x2a   :  { %1935 = vmatpush3.msra.mxu0 %v88_v3  ;;  %1969 = vmatprep.subr.mxu1 %v88_v3  ;;  %v2346_v17 = vld [vmem:[%s2551_s0] sm:$0xff]  ;;  %v2357_v19 = vld [vmem:[%s2552_s1 + $0x8] sm:$0xff]  ;;  %v2374_v21 = vld [vmem:[%s2552_s1 + $0x18] sm:$0xff]  ;;  %v322_v34 = vsub.s32 %v319_v29, %v321_v30 }
  0x2b   :  { %1936 = vmatprep.subr.mxu0 %v2270_v0  ;;  %1970 = vmatpush3.msra.mxu1 %v88_v3  ;;  %v2352_v18 = vld [vmem:[%s2552_s1] sm:$0xff]  ;;  %v2387_v23 = vld [vmem:[%s2552_s1 + $0x28] sm:$0xff]  ;;  %v2392_v24 = vld [vmem:[%s2552_s1 + $0x30] sm:$0xff] }
  0x2c   :  { %1937 = vmatpush3.msra.mxu0 %v87_v4  ;;  %1971 = vmatprep.subr.mxu1 %v87_v4  ;;  %v2380_v22 = vld [vmem:[%s2552_s1 + $0x20] sm:$0xff]  ;;  %v2399_v25 = vld [vmem:[%s2552_s1 + $0x38] sm:$0xff] }
  0x2d   :  { %1938 = vmatprep.subr.mxu0 %v2270_v0  ;;  %1972 = vmatpush3.msra.mxu1 %v87_v4  ;;  %v1814_v31 = vld [vmem:[%s2554_s3] ss:$0 sm:$0xff] }
  0x2e   :  { %1939 = vmatpush3.msra.mxu0 %v86_v5  ;;  %1973 = vmatprep.subr.mxu1 %v86_v5 }
  0x2f   :  { %1940 = vmatprep.subr.mxu0 %v2270_v0  ;;  %1974 = vmatpush3.msra.mxu1 %v86_v5 }
  0x30   :  { %1941 = vmatpush3.msra.mxu0 %v85_v6  ;;  %1975 = vmatprep.subr.mxu1 %v85_v6 }
  0x31   :  { %1942 = vmatprep.subr.mxu0 %v2270_v0  ;;  %1976 = vmatpush3.msra.mxu1 %v85_v6 }
  0x32   :  { %1943 = vmatpush3.msra.mxu0 %v84_v7  ;;  %1977 = vmatprep.subr.mxu1 %v84_v7 }
  0x33   :  { %1944 = vmatprep.subr.mxu0 %v2270_v0  ;;  %1978 = vmatpush3.msra.mxu1 %v84_v7 }
  0x34   :  { %1945 = vmatpush3.msra.mxu0 %v83_v8  ;;  %1979 = vmatprep.subr.mxu1 %v83_v8 }
  0x35   :  { %1946 = vmatprep.subr.mxu0 %v2270_v0  ;;  %1980 = vmatpush3.msra.mxu1 %v83_v8 }
  0x36   :  { %1947 = vmatpush3.msra.mxu0 %v82_v9  ;;  %1981 = vmatprep.subr.mxu1 %v82_v9 }
  0x37   :  { %1948 = vmatprep.subr.mxu0 %v2270_v0  ;;  %1982 = vmatpush3.msra.mxu1 %v82_v9 }
  0x38   :  { %1949 = vmatpush3.msra.mxu0 %v81_v10  ;;  %1983 = vmatprep.subr.mxu1 %v81_v10 }
  0x39   :  { %1950 = vmatprep.subr.mxu0 %v2270_v0  ;;  %1984 = vmatpush3.msra.mxu1 %v81_v10 }
  0x3a   :  { %1951 = vmatpush3.msra.mxu0 %v80_v11  ;;  %1985 = vmatprep.subr.mxu1 %v80_v11 }
  0x3b   :  { %1952 = vmatprep.subr.mxu0 %v2270_v0  ;;  %1986 = vmatpush3.msra.mxu1 %v80_v11 }
  0x3c   :  { %1953 = vmatpush3.msra.mxu0 %v79_v12  ;;  %1987 = vmatprep.subr.mxu1 %v79_v12 }
  0x3d   :  { %1954 = vmatprep.subr.mxu0 %v2270_v0  ;;  %1988 = vmatpush3.msra.mxu1 %v79_v12 }
  0x3e   :  { %1955 = vmatpush3.msra.mxu0 %v78_v13  ;;  %1989 = vmatprep.subr.mxu1 %v78_v13 }
  0x3f   :  { %1956 = vmatprep.subr.mxu0 %v2270_v0  ;;  %1990 = vmatpush3.msra.mxu1 %v78_v13 }
  0x40   :  { %1957 = vmatpush3.msra.mxu0 %v77_v14  ;;  %1991 = vmatprep.subr.mxu1 %v77_v14 }
  0x41   :  { %1958 = vmatprep.subr.mxu0 %v2270_v0  ;;  %1992 = vmatpush3.msra.mxu1 %v77_v14 }
  0x42   :  { %1959 = vmatpush3.msra.mxu0 %v76_v15  ;;  %1993 = vmatprep.subr.mxu1 %v76_v15 }
  0x43   :  { %1960 = vmatprep.subr.mxu0 %v2270_v0  ;;  %1994 = vmatpush3.msra.mxu1 %v76_v15 }
  0x44   :  { %1961 = vmatpush3.msra.mxu0 %v75_v16  ;;  %1995 = vmatprep.subr.mxu1 %v75_v16 }
  0x45   :  { %1963 = vmatmul.mubr.f32.vlgmr.msra.gmra.mxu0 %v2346_v17  ;;  %1996 = vmatpush3.msra.mxu1 %v75_v16 }
  0x46   :  { %1997 = vmatprep.mubr.f32.mxu1 %v2352_v18  ;;  %2009 = vmatprep.subr.mxu0 %v2270_v0 }
  0x47   :  { %1998 = vmatmul.mubr.f32.vlgmr.msra.gmra.mxu1 %v2357_v19  ;;  %2011 = vmatprep.mubr.msk.f32.mxu0 %vm2271_vm0, %v2270_v0 }
  0x48   :  { %2000 = vmatprep.mubr.f32.mxu1 %v2363_v20  ;;  %2029 = vmatprep.subr.mxu1 %v2270_v0 }
  0x4b   :  { %2001 = vmatmul.mubr.f32.gmra.mxu1 %v2374_v21 }
  0x4c   :  { %2003 = vmatprep.mubr.f32.mxu1 %v2380_v22 }
  0x4f   :  { %2004 = vmatmul.mubr.f32.gmra.mxu1 %v2387_v23 }
  0x50   :  { %2006 = vmatprep.mubr.f32.mxu1 %v2392_v24 }
  0x53   :  { %2007 = vmatmul.mubr.f32.gmra.mxu1 %v2399_v25 }
  0x54   :  { %2031 = vmatprep.mubr.msk.f32.mxu1 %vm2271_vm0, %v2270_v0 }
 0x105   :  { %v190_v32 = vpop.f32.mrf.mxu0 }
 0x106   :  { %v194_v33 = vmax.f32 %v190_v32, 0.0 }
 0x107   :  { %v1999_v35 = vpop.f32.mrf.mxu1  ;;  %v1964_v36 = vpop.f32.mrf.mxu0 }
 0x108   :  { %v314_v37 = vmul.f32 %v1814_v31, %v194_v33  ;;  %v301_v46 = vmax.f32 %v1999_v35, 0.0 }
 0x109   :  { %v261_v38 = vpop.f32.mrf.mxu1 }
 0x10a   :  { %v323_v39 = vrot.slane %v314_v37, %v322_v34  ;;  %v300_v40 = vmax.f32 %v261_v38, 0.0  ;;  %v316_v43 = vcombine.high %v314_v37, %v314_v37 }
 0x10b   :  { %v2002_v41 = vpop.f32.mrf.mxu1 }
 0x10c   :  { %v339_v42 = vrot.slane %v323_v39, %v322_v34  ;;  %2010 = vmatpush3.xpose.msra.mxu0 %v300_v40  ;;  %v331_v44 = vcombine.high %v323_v39, %v323_v39  ;;  %v330_v48 = vrot.slane %v316_v43, %v322_v34  ;;  %v303_v57 = vmax.f32 %v2002_v41, 0.0 }
 0x10d   :  { %v271_v45 = vpop.f32.mrf.mxu1  ;;  %2014 = vmatprep.subr.mxu0 %v2270_v0 }
 0x10e   :  { %v353_v50 = vrot.slane %v331_v44, %v322_v34  ;;  %v302_v51 = vmax.f32 %v271_v45, 0.0  ;;  %v346_v54 = vrot.slane %v330_v48, %v322_v34  ;;  %v361_v56 = vcombine.high %v339_v42, %v339_v42 }
 0x10f   :  { %v2005_v47 = vpop.f32.mrf.mxu1  ;;  %2012 = vmatmul.mubr.f32.vlgmr.msra.gmra.mxu0 %v339_v42  ;;  %v332_v59 = vcombine.high %v330_v48, %v330_v48 }
 0x110   :  { %2015 = vmatpush3.xpose.msra.mxu0 %v301_v46  ;;  %2016 = vmatprep.mubr.msk.f32.mxu0 %vm2271_vm0, %v2270_v0  ;;  %v363_v60 = vcombine.high %v353_v50, %v353_v50  ;;  %v362_v61 = vcombine.high %v346_v54, %v346_v54  ;;  %v305_v62 = vmax.f32 %v2005_v47, 0.0 }
 0x111   :  { %v281_v49 = vpop.f32.mrf.mxu1  ;;  %2019 = vmatprep.subr.mxu0 %v2270_v0  ;;  %v360_v63 = vrot.slane %v332_v59, %v322_v34 }
 0x112   :  { %v304_v52 = vmax.f32 %v281_v49, 0.0 }
 0x113   :  { %v2008_v53 = vpop.f32.mrf.mxu1  ;;  %2017 = vmatmul.mubr.f32.vlgmr.msra.gmra.mxu0 %v353_v50  ;;  %v364_v2 = vcombine.high %v360_v63, %v360_v63 }
 0x114   :  { %2020 = vmatpush3.xpose.msra.mxu0 %v302_v51  ;;  %2030 = vmatpush3.xpose.msra.mxu1 %v304_v52  ;;  %v307_v1 = vmax.f32 %v2008_v53, 0.0 }
 0x115   :  { %v291_v55 = vpop.f32.mrf.mxu1  ;;  %2021 = vmatprep.mubr.msk.f32.mxu0 %vm2271_vm0, %v2270_v0  ;;  %2024 = vmatprep.subr.mxu0 %v2270_v0 }
 0x116   :  { %v306_v58 = vmax.f32 %v291_v55, 0.0  ;;  %2039 = vmatprep.subr.mxu1 %v2270_v0 }
 0x117   :  { %2022 = vmatmul.mubr.f32.vlgmr.msra.gmra.mxu0 %v361_v56  ;;  %2032 = vmatmul.mubr.f32.vlgmr.msra.gmra.mxu1 %v346_v54 }
 0x118   :  { %2025 = vmatpush3.xpose.msra.mxu0 %v303_v57  ;;  %2040 = vmatpush3.xpose.msra.mxu1 %v306_v58 }
 0x119   :  { %2026 = vmatprep.mubr.msk.f32.mxu0 %vm2271_vm0, %v2270_v0  ;;  %2041 = vmatprep.mubr.msk.f32.mxu1 %vm2271_vm0, %v2270_v0 }
 0x11a   :  { %2034 = vmatprep.subr.mxu0 %v2270_v0  ;;  %2049 = vmatprep.subr.mxu1 %v2270_v0 }
 0x11b   :  { %2027 = vmatmul.mubr.f32.vlgmr.msra.gmra.mxu0 %v363_v60  ;;  %2042 = vmatmul.mubr.f32.vlgmr.msra.gmra.mxu1 %v362_v61 }
 0x11c   :  { %2035 = vmatpush3.xpose.msra.mxu0 %v305_v62  ;;  %2036 = vmatprep.mubr.msk.f32.mxu0 %vm2271_vm0, %v2270_v0 }
 0x11d   :  { %2044 = vmatprep.subr.mxu0 %v2270_v0  ;;  %2050 = vmatpush3.msra.mxu1 %v2352_v18 }
 0x11e   :  { %2051 = vmatprep.mubr.msk.f32.mxu1 %vm2271_vm0, %v2270_v0  ;;  %2059 = vmatprep.subr.mxu1 %v2270_v0 }
 0x11f   :  { %2037 = vmatmul.mubr.f32.vlgmr.msra.gmra.mxu0 %v360_v63 }
 0x120   :  { %2045 = vmatpush3.xpose.msra.mxu0 %v307_v1  ;;  %2046 = vmatprep.mubr.msk.f32.mxu0 %vm2271_vm0, %v2270_v0 }
 0x121   :  { %2054 = vmatprep.subr.mxu0 %v2270_v0 }
 0x123   :  { %2047 = vmatmul.mubr.f32.vlgmr.msra.gmra.mxu0 %v364_v2 }
 0x124   :  { %2055 = vmatpush3.msra.mxu0 %v2357_v19  ;;  %2056 = vmatprep.mubr.msk.f32.mxu0 %vm2271_vm0, %v2270_v0 }
 0x125   :  { %2064 = vmatprep.subr.mxu0 %v2270_v0 }
 0x1cf   :  { %v439_v3 = vpop.f32.mrf.mxu0 }
 0x1d0   :  { %v934_v4 = vsel %vm933_vm1, %v439_v3, -inf }
 0x1d1   :  { %935 = vmax.xlane.f32.xlu0 %v934_v4  ;;  %v2013_v5 = vpop.f32.mrf.mxu0 }
 0x1d3   :  { %v509_v6 = vpop.f32.mrf.mxu0 }
 0x1d4   :  { %v937_v7 = vsel %vm933_vm1, %v509_v6, -inf }
 0x1d5   :  { %938 = vmax.xlane.f32.xlu0 %v937_v7  ;;  %v2018_v8 = vpop.f32.mrf.mxu0 }
 0x1d7   :  { %v579_v9 = vpop.f32.mrf.mxu0  ;;  %v719_v10 = vpop.f32.mrf.mxu1 }
 0x1d8   :  { %v946_v11 = vsel %vm933_vm1, %v719_v10, -inf  ;;  %v940_v12 = vsel %vm933_vm1, %v579_v9, -inf }
 0x1d9   :  { %v2033_v13 = vpop.f32.mrf.mxu1  ;;  %947 = vmax.xlane.f32.xlu0 %v946_v11  ;;  %941 = vmax.xlane.f32.xlu1 %v940_v12  ;;  %v2023_v14 = vpop.f32.mrf.mxu0 }
 0x1db   :  { %v649_v15 = vpop.f32.mrf.mxu0  ;;  %v859_v16 = vpop.f32.mrf.mxu1 }
 0x1dc   :  { %v952_v18 = vsel %vm933_vm1, %v859_v16, -inf  ;;  %v943_v19 = vsel %vm933_vm1, %v649_v15, -inf }
 0x1dd   :  { %v2043_v26 = vpop.f32.mrf.mxu1  ;;  %953 = vmax.xlane.f32.xlu0 %v952_v18  ;;  %944 = vmax.xlane.f32.xlu1 %v943_v19  ;;  %v2028_v27 = vpop.f32.mrf.mxu0 }
 0x1df   :  { %v789_v28 = vpop.f32.mrf.mxu0 }
 0x1e0   :  { %v949_v29 = vsel %vm933_vm1, %v789_v28, -inf }
 0x1e1   :  { %950 = vmax.xlane.f32.xlu1 %v949_v29  ;;  %v2038_v30 = vpop.f32.mrf.mxu0 }
 0x1e3   :  { %v929_v31 = vpop.f32.mrf.mxu0 }
 0x1e4   :  { %v955_v32 = vsel %vm933_vm1, %v929_v31, -inf }
 0x1e5   :  { %956 = vmax.xlane.f32.xlu1 %v955_v32  ;;  %v2048_v33 = vpop.f32.mrf.mxu0 }
 0x25a   :  { %v936_v34 = vpop.xlane.xlu0 %935 }
 0x25b   :  { %v958_v35 = vsub.f32 %v439_v3, %v936_v34 }
 0x25d   :  { %v966_v36 = vmul.f32 1.442695, %v958_v35 }
 0x25e   :  { %v939_v37 = vpop.xlane.xlu0 %938 }
 0x25f   :  { %2167 = vpow2.f32 %v966_v36  ;;  %v959_v38 = vsub.f32 %v509_v6, %v939_v37 }
 0x261   :  { %v968_v39 = vmul.f32 1.442695, %v959_v38 }
 0x262   :  { %v948_v40 = vpop.xlane.xlu0 %947  ;;  %v942_v41 = vpop.xlane.xlu1 %941 }
 0x263   :  { %2169 = vpow2.f32 %v968_v39  ;;  %v962_v42 = vsub.f32 %v719_v10, %v948_v40  ;;  %v960_v43 = vsub.f32 %v579_v9, %v942_v41  ;;  %v123_v40 = vld [vmem:[#allocation6 + $0x78] sm:$0xff] }
 0x265   :  { %v970_v44 = vmul.f32 1.442695, %v960_v43  ;;  %v974_v45 = vmul.f32 1.442695, %v962_v42 }
 0x266   :  { %v954_v46 = vpop.xlane.xlu0 %953  ;;  %v945_v47 = vpop.xlane.xlu1 %944 }
 0x267   :  { %v964_v48 = vsub.f32 %v859_v16, %v954_v46  ;;  %v961_v49 = vsub.f32 %v649_v15, %v945_v47  ;;  %2171 = vpow2.f32 %v970_v44  ;;  %v122_v44 = vld [vmem:[#allocation6 + $0x70] sm:$0xff] }
 0x268   :  { %2173 = vpow2.f32 %v974_v45 }
 0x269   :  { %v972_v50 = vmul.f32 1.442695, %v961_v49  ;;  %v978_v51 = vmul.f32 1.442695, %v964_v48  ;;  %v107_v49 = vld [vmem:[#allocation4 + $0x78] sm:$0xff] }
 0x26a   :  { %v951_v52 = vpop.xlane.xlu1 %950 }
 0x26b   :  { %v963_v53 = vsub.f32 %v789_v28, %v951_v52  ;;  %2175 = vpow2.f32 %v972_v50  ;;  %v121_v50 = vld [vmem:[#allocation6 + $0x68] sm:$0xff]  ;;  %v106_v52 = vld [vmem:[#allocation4 + $0x70] sm:$0xff] }
 0x26c   :  { %v2168_v54 = vpop.eup %2167  ;;  %2177 = vpow2.f32 %v978_v51 }
 0x26d   :  { %v976_v55 = vmul.f32 1.442695, %v963_v53  ;;  %v982_v56 = vsel %vm933_vm1, %v2168_v54, 0.0  ;;  %v120_v53 = vld [vmem:[#allocation6 + $0x60] sm:$0xff] }
 0x26e   :  { %983 = vadd.xlane.f32.xlu0 %v982_v56  ;;  %v957_v57 = vpop.xlane.xlu1 %956  ;;  %v105_v56 = vld [vmem:[#allocation4 + $0x68] sm:$0xff] }
 0x26f   :  { %2179 = vpow2.f32 %v976_v55  ;;  %v965_v58 = vsub.f32 %v929_v31, %v957_v57  ;;  %v104_v57 = vld [vmem:[#allocation4 + $0x60] sm:$0xff] }
 0x270   :  { %v2170_v59 = vpop.eup %2169 }
 0x271   :  { %v980_v60 = vmul.f32 1.442695, %v965_v58  ;;  %v985_v61 = vsel %vm933_vm1, %v2170_v59, 0.0  ;;  %v119_v58 = vld [vmem:[#allocation6 + $0x58] sm:$0xff] }
 0x272   :  { %986 = vadd.xlane.f32.xlu1 %v985_v61  ;;  %v102_v61 = vld [vmem:[#allocation4 + $0x50] sm:$0xff] }
 0x273   :  { %2181 = vpow2.f32 %v980_v60  ;;  %v118_v60 = vld [vmem:[#allocation6 + $0x50] sm:$0xff] }
 0x274   :  { %v2172_v62 = vpop.eup %2171 }
 0x275   :  { %v988_v63 = vsel %vm933_vm1, %v2172_v62, 0.0  ;;  %v2174_v1 = vpop.eup %2173 }
 0x276   :  { %989 = vadd.xlane.f32.xlu0 %v988_v63  ;;  %v994_v3 = vsel %vm933_vm1, %v2174_v1, 0.0  ;;  %v101_v63 = vld [vmem:[#allocation4 + $0x48] sm:$0xff] }
 0x278   :  { %v2176_v2 = vpop.eup %2175 }
 0x279   :  { %v991_v4 = vsel %vm933_vm1, %v2176_v2, 0.0  ;;  %v2448_v5 = vpop.eup %2177 }
 0x27a   :  { %995 = vadd.xlane.f32.xlu0 %v994_v3  ;;  %992 = vadd.xlane.f32.xlu1 %v991_v4  ;;  %v1000_v8 = vsel %vm933_vm1, %v2448_v5, 0.0  ;;  %v115_v3 = vld [vmem:[#allocation6 + $0x38] sm:$0xff] }
 0x27b   :  { %v99_v4 = vld [vmem:[#allocation4 + $0x38] sm:$0xff] }
 0x27c   :  { %v2450_v6 = vpop.eup %2179 }
 0x27d   :  { %v997_v7 = vsel %vm933_vm1, %v2450_v6, 0.0 }
 0x27e   :  { %1001 = vadd.xlane.f32.xlu0 %v1000_v8  ;;  %998 = vadd.xlane.f32.xlu1 %v997_v7  ;;  %v113_v7 = vld [vmem:[#allocation6 + $0x28] sm:$0xff] }
 0x27f   :  { %v97_v8 = vld [vmem:[#allocation4 + $0x28] sm:$0xff] }
 0x280   :  { %v2456_v9 = vpop.eup %2181 }
 0x281   :  { %v1003_v10 = vsel %vm933_vm1, %v2456_v9, 0.0 }
 0x282   :  { %1004 = vadd.xlane.f32.xlu1 %v1003_v10  ;;  %v96_v10 = vld [vmem:[#allocation4 + $0x20] sm:$0xff] }
 0x2f7   :  { %v984_v11 = vpop.xlane.xlu0 %983 }
 0x2f8   :  { %2183 = vrcp.f32 %v984_v11  ;;  %v111_v11 = vld [vmem:[#allocation6 + $0x18] sm:$0xff] }
 0x2fb   :  { %v987_v12 = vpop.xlane.xlu1 %986 }
 0x2fc   :  { %2185 = vrcp.f32 %v987_v12  ;;  %v95_v12 = vld [vmem:[#allocation4 + $0x18] sm:$0xff] }
 0x2ff   :  { %v990_v13 = vpop.xlane.xlu0 %989 }
 0x300   :  { %2187 = vrcp.f32 %v990_v13  ;;  %v110_v13 = vld [vmem:[#allocation6 + $0x10] sm:$0xff] }
 0x303   :  { %v996_v14 = vpop.xlane.xlu0 %995  ;;  %v993_v15 = vpop.xlane.xlu1 %992 }
 0x304   :  { %2189 = vrcp.f32 %v996_v14  ;;  %v94_v14 = vld [vmem:[#allocation4 + $0x10] sm:$0xff] }
 0x305   :  { %v2184_v16 = vpop.eup %2183  ;;  %2191 = vrcp.f32 %v993_v15  ;;  %v109_v15 = vld [vmem:[#allocation6 + $0x8] sm:$0xff] }
 0x306   :  { %v1022_v18 = vmul.f32 %v2184_v16, %v2168_v54  ;;  %v93_v16 = vld [vmem:[#allocation4 + $0x8] sm:$0xff] }
 0x307   :  { %v1002_v19 = vpop.xlane.xlu0 %1001  ;;  %v999_v26 = vpop.xlane.xlu1 %998 }
 0x308   :  { %2052 = vmatmul.mubr.msk.f32.vlgmr.msra.gmra.mxu1 %vm1061_vm2, %v1022_v18  ;;  %2193 = vrcp.f32 %v1002_v19  ;;  %v92_v19 = vld [vmem:[#allocation4] sm:$0xff] }
 0x309   :  { %v2186_v27 = vpop.eup %2185  ;;  %2060 = vmatpush3.msra.mxu1 %v2363_v20  ;;  %2061 = vmatprep.mubr.msk.f32.mxu1 %vm2271_vm0, %v2270_v0  ;;  %2195 = vrcp.f32 %v999_v26 }
 0x30a   :  { %v1023_v28 = vmul.f32 %v2186_v27, %v2170_v59  ;;  %2069 = vmatprep.subr.mxu1 %v2270_v0  ;;  %v103_v59 = vld [vmem:[#allocation4 + $0x58] sm:$0xff] }
 0x30b   :  { %v1005_v29 = vpop.xlane.xlu1 %1004 }
 0x30c   :  { %2057 = vmatmul.mubr.msk.f32.vlgmr.msra.gmra.mxu0 %vm1061_vm2, %v1023_v28  ;;  %2197 = vrcp.f32 %v1005_v29  ;;  %v1039_v32 = vrot.slane %v1023_v28, 7 }
 0x30d   :  { %2065 = vmatpush3.msra.mxu0 %v2374_v21  ;;  %2066 = vmatprep.mubr.msk.f32.mxu0 %vm2271_vm0, %v2270_v0  ;;  %v2188_v30 = vpop.eup %2187 }
 0x30e   :  { %2074 = vmatprep.subr.mxu0 %v2270_v0  ;;  %v1024_v20 = vmul.f32 %v2188_v30, %v2172_v62  ;;  %v117_v62 = vld [vmem:[#allocation6 + $0x48] sm:$0xff] }
 0x310   :  { %2062 = vmatmul.mubr.msk.f32.vlgmr.msra.gmra.mxu1 %vm1061_vm2, %v1024_v20  ;;  %v1042_v21 = vrot.slane %v1024_v20, 6 }
 0x311   :  { %v2190_v31 = vpop.eup %2189  ;;  %2070 = vmatpush3.msra.mxu1 %v2380_v22  ;;  %2071 = vmatprep.mubr.msk.f32.mxu1 %vm2271_vm0, %v2270_v0  ;;  %v1041_v22 = vsel %vm1040_vm3, %v1039_v32, %v1022_v18  ;;  %v108_v18 = vld [vmem:[#allocation6] sm:$0xff] }
 0x312   :  { %v2192_v33 = vpop.eup %2191  ;;  %v1026_v34 = vmul.f32 %v2190_v31, %v2174_v1  ;;  %2079 = vmatprep.subr.mxu1 %v2270_v0  ;;  %v1044_v41 = vsel %vm1043_vm4, %v1042_v21, %v1041_v22  ;;  %v116_v1 = vld [vmem:[#allocation6 + $0x40] sm:$0xff] }
 0x313   :  { %v1025_v35 = vmul.f32 %v2192_v33, %v2176_v2  ;;  %v100_v2 = vld [vmem:[#allocation4 + $0x40] sm:$0xff] }
 0x314   :  { %2072 = vmatmul.mubr.msk.f32.vlgmr.msra.gmra.mxu1 %vm1061_vm2, %v1026_v34  ;;  %v1048_v42 = vrot.slane %v1026_v34, 4 }
 0x315   :  { %v2194_v36 = vpop.eup %2193  ;;  %2067 = vmatmul.mubr.msk.f32.vlgmr.msra.gmra.mxu0 %vm1061_vm2, %v1025_v35  ;;  %2080 = vmatpush3.msra.mxu1 %v2392_v24  ;;  %v1045_v37 = vrot.slane %v1025_v35, 5 }
 0x316   :  { %v2196_v38 = vpop.eup %2195  ;;  %2075 = vmatpush3.msra.mxu0 %v2387_v23  ;;  %2076 = vmatprep.mubr.msk.f32.mxu0 %vm2271_vm0, %v2270_v0  ;;  %v1028_v39 = vmul.f32 %v2194_v36, %v2448_v5  ;;  %v114_v5 = vld [vmem:[#allocation6 + $0x30] sm:$0xff] }
 0x317   :  { %2081 = vmatprep.mubr.msk.f32.mxu1 %vm2271_vm0, %v2270_v0  ;;  %v1027_v24 = vmul.f32 %v2196_v38, %v2450_v6  ;;  %2084 = vmatprep.subr.mxu0 %v2270_v0  ;;  %v1047_v43 = vsel %vm1046_vm5, %v1045_v37, %v1044_v41  ;;  %v98_v6 = vld [vmem:[#allocation4 + $0x30] sm:$0xff] }
 0x318   :  { %2082 = vmatmul.mubr.msk.f32.vlgmr.msra.gmra.mxu1 %vm1061_vm2, %v1028_v39  ;;  %2089 = vmatprep.subr.mxu1 %v2270_v0  ;;  %v1054_v46 = vrot.slane %v1028_v39, 2  ;;  %v1050_v48 = vsel %vm1049_vm6, %v1048_v42, %v1047_v43 }
 0x319   :  { %v2198_v23 = vpop.eup %2197  ;;  %2077 = vmatmul.mubr.msk.f32.vlgmr.msra.gmra.mxu0 %vm1061_vm2, %v1027_v24  ;;  %2090 = vmatpush3.msra.mxu1 %v123_v40  ;;  %v1051_v45 = vrot.slane %v1027_v24, 3 }
 0x31a   :  { %2085 = vmatpush3.msra.mxu0 %v2399_v25  ;;  %2086 = vmatprep.mubr.msk.f32.mxu0 %vm2271_vm0, %v2270_v0  ;;  %v1029_v47 = vmul.f32 %v2198_v23, %v2456_v9  ;;  %v112_v9 = vld [vmem:[#allocation6 + $0x20] sm:$0xff] }
 0x31b   :  { %2124 = vmatprep.subr.mxu0 %v2270_v0  ;;  %2091 = vmatprep.subr.mxu1 %v2270_v0  ;;  %v1053_v51 = vsel %vm1052_vm7, %v1051_v45, %v1050_v48 }
 0x31c   :  { %2092 = vmatpush3.msra.mxu1 %v122_v44  ;;  %2121 = vmatprep.mubr.msk.f32.mxu1 %vm2271_vm0, %v2270_v0  ;;  %v1057_v25 = vrot.slane %v1029_v47, 1  ;;  %v1056_v54 = vsel %vm1055_vm8, %v1054_v46, %v1053_v51 }
 0x31d   :  { %2087 = vmatmul.mubr.msk.f32.vlgmr.msra.gmra.mxu0 %vm1061_vm2, %v1029_v47  ;;  %2093 = vmatprep.subr.mxu1 %v2270_v0 }
 0x31e   :  { %2125 = vmatpush3.msra.mxu0 %v107_v49  ;;  %2094 = vmatpush3.msra.mxu1 %v121_v50  ;;  %v1059_v55 = vsel %vm1058_vm9, %v1057_v25, %v1056_v54 }
 0x31f   :  { %2126 = vmatprep.subr.mxu0 %v2270_v0  ;;  %2095 = vmatprep.subr.mxu1 %v2270_v0  ;;  %1062 = vst.msk [vmem:[%s2558_s7] sm:$0xff] %vm1061_vm2, %v1059_v55 }
 0x320   :  { %2127 = vmatpush3.msra.mxu0 %v106_v52  ;;  %2096 = vmatpush3.msra.mxu1 %v120_v53 }
 0x321   :  { %2128 = vmatprep.subr.mxu0 %v2270_v0  ;;  %2097 = vmatprep.subr.mxu1 %v2270_v0 }
 0x322   :  { %2129 = vmatpush3.msra.mxu0 %v105_v56  ;;  %2156 = vmatprep.mubr.msk.f32.mxu0 %vm2271_vm0, %v2270_v0 }
 0x323   :  { %2130 = vmatprep.subr.mxu0 %v2270_v0  ;;  %2098 = vmatpush3.msra.mxu1 %v119_v58 }
 0x324   :  { %2131 = vmatpush3.msra.mxu0 %v104_v57  ;;  %2099 = vmatprep.subr.mxu1 %v2270_v0 }
 0x325   :  { %2132 = vmatprep.subr.mxu0 %v2270_v0  ;;  %2100 = vmatpush3.msra.mxu1 %v118_v60 }
 0x326   :  { %2133 = vmatpush3.msra.mxu0 %v103_v59  ;;  %2101 = vmatprep.subr.mxu1 %v2270_v0 }
 0x327   :  { %2134 = vmatprep.subr.mxu0 %v2270_v0  ;;  %2102 = vmatpush3.msra.mxu1 %v117_v62 }
 0x328   :  { %2135 = vmatpush3.msra.mxu0 %v102_v61  ;;  %2103 = vmatprep.subr.mxu1 %v2270_v0 }
 0x329   :  { %2136 = vmatprep.subr.mxu0 %v2270_v0  ;;  %2104 = vmatpush3.msra.mxu1 %v116_v1 }
 0x32a   :  { %2137 = vmatpush3.msra.mxu0 %v101_v63  ;;  %2105 = vmatprep.subr.mxu1 %v2270_v0 }
 0x32b   :  { %2138 = vmatprep.subr.mxu0 %v2270_v0  ;;  %2106 = vmatpush3.msra.mxu1 %v115_v3 }
 0x32c   :  { %2139 = vmatpush3.msra.mxu0 %v100_v2  ;;  %2107 = vmatprep.subr.mxu1 %v2270_v0 }
 0x32d   :  { %2140 = vmatprep.subr.mxu0 %v2270_v0  ;;  %2108 = vmatpush3.msra.mxu1 %v114_v5 }
 0x32e   :  { %2141 = vmatpush3.msra.mxu0 %v99_v4  ;;  %2109 = vmatprep.subr.mxu1 %v2270_v0 }
 0x32f   :  { %2142 = vmatprep.subr.mxu0 %v2270_v0  ;;  %2110 = vmatpush3.msra.mxu1 %v113_v7 }
 0x330   :  { %2143 = vmatpush3.msra.mxu0 %v98_v6  ;;  %2111 = vmatprep.subr.mxu1 %v2270_v0 }
 0x331   :  { %2144 = vmatprep.subr.mxu0 %v2270_v0  ;;  %2112 = vmatpush3.msra.mxu1 %v112_v9 }
 0x332   :  { %2145 = vmatpush3.msra.mxu0 %v97_v8  ;;  %2113 = vmatprep.subr.mxu1 %v2270_v0 }
 0x333   :  { %2146 = vmatprep.subr.mxu0 %v2270_v0  ;;  %2114 = vmatpush3.msra.mxu1 %v111_v11 }
 0x334   :  { %2147 = vmatpush3.msra.mxu0 %v96_v10  ;;  %2115 = vmatprep.subr.mxu1 %v2270_v0 }
 0x335   :  { %2148 = vmatprep.subr.mxu0 %v2270_v0  ;;  %2116 = vmatpush3.msra.mxu1 %v110_v13 }
 0x336   :  { %2149 = vmatpush3.msra.mxu0 %v95_v12  ;;  %2117 = vmatprep.subr.mxu1 %v2270_v0 }
 0x337   :  { %2150 = vmatprep.subr.mxu0 %v2270_v0  ;;  %2118 = vmatpush3.msra.mxu1 %v109_v15 }
 0x338   :  { %2151 = vmatpush3.msra.mxu0 %v94_v14  ;;  %2119 = vmatprep.subr.mxu1 %v2270_v0 }
 0x339   :  { %2152 = vmatprep.subr.mxu0 %v2270_v0  ;;  %2120 = vmatpush3.msra.mxu1 %v108_v18 }
 0x33a   :  { %2153 = vmatpush3.msra.mxu0 %v93_v16  ;;  %2122 = vmatmul.mubr.f32.vlgmr.msra.gmra.mxu1 %v2346_v17 }
 0x33b   :  { %2154 = vmatprep.subr.mxu0 %v2270_v0 }
 0x33c   :  { %2155 = vmatpush3.msra.mxu0 %v92_v19 }
 0x3c8   :  { %v1131_v26 = vpop.f32.mrf.mxu1 }
 0x3ca   :  { %v2053_v27 = vpop.f32.mrf.mxu1 }
 0x3cc   :  { %v1203_v28 = vpop.f32.mrf.mxu0 }
 0x3cd   :  { %v1717_v20 = vrot.slane %v1203_v28, 7 }
 0x3ce   :  { %v2058_v29 = vpop.f32.mrf.mxu0 }
 0x3cf   :  { %v1718_v21 = vsel %vm1040_vm3, %v1717_v20, %v1131_v26 }
 0x3d0   :  { %v1275_v30 = vpop.f32.mrf.mxu1 }
 0x3d1   :  { %v1719_v32 = vrot.slane %v1275_v30, 6 }
 0x3d2   :  { %v2063_v31 = vpop.f32.mrf.mxu1 }
 0x3d3   :  { %v1720_v0 = vsel %vm1043_vm4, %v1719_v32, %v1718_v21 }
 0x3d4   :  { %v1419_v33 = vpop.f32.mrf.mxu1 }
 0x3d5   :  { %v1347_v34 = vpop.f32.mrf.mxu0  ;;  %v1723_v22 = vrot.slane %v1419_v33, 4 }
 0x3d6   :  { %v1721_v35 = vrot.slane %v1347_v34, 5  ;;  %v2073_v36 = vpop.f32.mrf.mxu1 }
 0x3d7   :  { %v2068_v37 = vpop.f32.mrf.mxu0 }
 0x3d8   :  { %v1722_v17 = vsel %vm1046_vm5, %v1721_v35, %v1720_v0  ;;  %v1563_v38 = vpop.f32.mrf.mxu1 }
 0x3d9   :  { %v1491_v39 = vpop.f32.mrf.mxu0  ;;  %v1724_v42 = vsel %vm1049_vm6, %v1723_v22, %v1722_v17  ;;  %v1727_v24 = vrot.slane %v1563_v38, 2 }
 0x3da   :  { %v1725_v40 = vrot.slane %v1491_v39, 3  ;;  %v2083_v41 = vpop.f32.mrf.mxu1 }
 0x3db   :  { %v2078_v43 = vpop.f32.mrf.mxu0 }
 0x3dc   :  { %v1726_v23 = vsel %vm1052_vm7, %v1725_v40, %v1724_v42 }
 0x3dd   :  { %v1635_v44 = vpop.f32.mrf.mxu0  ;;  %v1728_v46 = vsel %vm1055_vm8, %v1727_v24, %v1726_v23 }
 0x3de   :  { %v1729_v45 = vrot.slane %v1635_v44, 1 }
 0x3df   :  { %v2088_v47 = vpop.f32.mrf.mxu0 }
 0x3e0   :  { %v1730_v48 = vsel %vm1058_vm9, %v1729_v45, %v1728_v46 }
 0x3e1   :  { %2157 = vmatmul.mubr.f32.vlgmr.msra.gmra.mxu0 %v1730_v48 }
 0x3fa   :  { %v1705_v49 = vpop.f32.mrf.mxu1 }
 0x3fc   :  { %v2123_v50 = vpop.f32.mrf.mxu1 }
 0x4a1   :  { %v1798_v51 = vpop.f32.mrf.mxu0 }
 0x4a2   :  { %v1799_v25 = vadd.f32 %v1798_v51, %v1705_v49 }
 0x4a3   :  { %v2158_v52 = vpop.f32.mrf.mxu0 }
 0x4a4   :  { %2199 = vtanh.f32 %v1799_v25 }
 0x4b1   :  { %v2200_v53 = vpop.eup %2199 }
 0x4b2   :  { %1803 = vst [vmem:[%s2557_s6] sm:$0xff] %v2200_v53 }
 0x4b3   :  { %1812 = vsyncpa [#allocation3], 1 }
 0x4b4   :  { %1813 = vsyncpa [#allocation5], 1 }

</bundles_post_ra>
